<compile_context>
chip_gen: v6e
topology: v6e:2x2x1
jax: 0.10.0
libtpu: 0.0.40
codegen_flags: <defaults>
</compile_context>

<pallas_src>
import functools
import math

import jax
import jax.numpy as jnp
from jax.experimental import pallas as pl
from jax.experimental.pallas import tpu as pltpu

KSIZE = 4
STRIDE = 2
PAD = 1


def _cdiv(a, b):
    return -(-a // b)


def _round_up(a, b):
    return _cdiv(a, b) * b


def _phase_weight_matrix(weight):
    """(C, C, 4, 4) ConvTranspose2d weight -> (4C, 4C) phase matrix.

    Rows are (dy', dx', ci): the 2x2 input tap and input channel.
    Cols are (dy,  dx,  co): the output sub-pixel phase and output channel.
    Window (j, i) over the (1,1)-padded input produces output pixel
    (2j - 1 + dy, 2i - 1 + dx); the kernel-tap relation is kh = dy - 2*dy' + 2.
    """
    C = weight.shape[0]
    tbl = jnp.array([[2, 3], [0, 1]], dtype=jnp.int32)          # [dy', dy] -> kh
    # w_phase[ci, co, dy', dy, dx', dx] = weight[ci, co, kh, kw]
    w_phase = weight[:, :, tbl[:, :, None, None], tbl[None, None, :, :]]
    w_full = jnp.transpose(w_phase, (2, 4, 0, 3, 5, 1))         # (dy',dx',ci,dy,dx,co)
    return w_full.reshape(4 * C, 4 * C)


def _upsample_band_kernel(x_ref, h_ref, w_ref, b_ref, o_ref, s_ref, *, m, wp, c):
    """One band of TJ padded rows -> phase-packed (M, 4C) output.

    x_ref: (1, M, C)     flat band of the padded image (M = TJ*WP pixels)
    h_ref: (1, 1, WP, C) halo: the single padded row just below the band
    w_ref: (4C, 4C)      phase weight matrix, rows ordered (dy', dx', ci)
    b_ref: (1, 4C)       phase-packed bias row (f32)
    o_ref: (1, M, 4C)    phase-packed output for this band
    s_ref: (M, 4C)       im2col scratch (VMEM)
    """
    halo = h_ref[0, 0]                                           # (WP, C)

    # In-kernel im2col, once per band: the window at flat pixel p taps the
    # flat pixels p, p+1, p+WP, p+WP+1 of the padded image.  Rows that run
    # past the band come from the halo row.  (The very last window of a band
    # sits on the zero-pad column and its output is cropped, so its final tap
    # value is irrelevant -- any in-bounds row will do.)
    s_ref[:, 0:c] = x_ref[0]                                     # tap (0, 0)
    s_ref[0:m - 1, c:2 * c] = x_ref[0, 1:m, :]                   # tap (0, 1)
    s_ref[m - 1:m, c:2 * c] = halo[0:1, :]
    s_ref[0:m - wp, 2 * c:3 * c] = x_ref[0, wp:m, :]             # tap (1, 0)
    s_ref[m - wp:m, 2 * c:3 * c] = halo
    s_ref[0:m - wp - 1, 3 * c:4 * c] = x_ref[0, wp + 1:m, :]     # tap (1, 1)
    s_ref[m - wp - 1:m - 1, 3 * c:4 * c] = halo
    s_ref[m - 1:m, 3 * c:4 * c] = halo[wp - 1:wp, :]             # cropped window

    # Single fused K=4C matmul for the whole band (f32 accumulation), one
    # bias add, one lane/sublane-dense store of the whole band.
    acc = jnp.dot(s_ref[...], w_ref[...], preferred_element_type=jnp.float32)
    o_ref[0] = (acc + b_ref[...]).astype(o_ref.dtype)


def upsample_forward(x, weight, bias, t=None, *, compute_dtype=None):
    """Matches nn.ConvTranspose2d(C, C, kernel_size=4, stride=2, padding=1)(x).

    x:      (N, C, H, W) float32
    weight: (C, C, 4, 4) float32  -- PyTorch ConvTranspose2d layout (ci, co, kh, kw)
    bias:   (C,)         float32
    t:      ignored (the PyTorch forward takes it but never uses it)
    compute_dtype: e.g. jnp.bfloat16 on v6e/v7x to halve the HBM read of the
                   input/weights (accumulation stays f32); None keeps x.dtype.
    returns (N, C, 2H, 2W) in x.dtype
    """
    del t  # unused, exactly like the PyTorch module
    N, C, H, W = x.shape
    OH, OW = STRIDE * H, STRIDE * W
    WP = W + 2                      # padded width == flat windows per padded row
    H1 = H + 1                      # window rows that contribute un-cropped output

    out_dtype = x.dtype
    cdtype = compute_dtype if compute_dtype is not None else x.dtype
    esz = jnp.dtype(cdtype).itemsize
    osz = jnp.dtype(out_dtype).itemsize

    # Band height TJ: a multiple of g so the flat band length TJ*WP is sublane
    # (8) aligned; sized for ~2 MiB of output per band, then shrunk to fit the
    # VMEM budget.  (8 and 16 are multiples of every possible g in {1,2,4,8}.)
    g = 8 // math.gcd(WP, 8)
    try:
        cap = pltpu.get_tpu_info().vmem_capacity_bytes
    except Exception:
        cap = 64 * 2 ** 20          # conservative fallback (v7x physical)
    budget = int(0.85 * cap)        # leave headroom for Mosaic internal scratch

    def vmem_est(tj):
        m = tj * WP
        return (2 * m * C * esz             # input band (double-buffered)
                + 2 * WP * C * esz          # halo row
                + 2 * m * 4 * C * osz       # output band (double-buffered)
                + m * 4 * C * esz           # im2col scratch
                + 2 * 16 * C * C * esz + 2 * 4 * C * 4)   # weights + bias

    tj_target = max(1, (2 * 2 ** 20) // max(1, WP * 4 * C * osz))
    TJ = max(8, (min(tj_target, _round_up(H1, g)) // g) * g)
    NB = _cdiv(H1, TJ)
    TJ = max(8, _round_up(_cdiv(H1, NB), g))        # re-balance: fewer wasted pad rows
    while vmem_est(TJ) > budget and TJ - g >= 8:
        TJ -= g
    # TODO(synk): add a W-chunk grid axis if vmem_est(8) still exceeds the budget
    # (only reachable for very large W*C).
    NB = _cdiv(H1, TJ)
    HR = NB * TJ                    # window rows actually computed (>= H1)
    M = TJ * WP                     # flat windows per band (multiple of 8)

    # Data prep over the (4x smaller) input: NHWC, zero pad, flatten rows, and
    # pull out the NB single-row halos as a tiny side array.
    x_nhwc = jnp.transpose(x, (0, 2, 3, 1)).astype(cdtype)
    x_pad = jnp.pad(x_nhwc, ((0, 0), (1, HR - H), (1, 1), (0, 0)))  # (N, HR+1, WP, C)
    x_flat = x_pad[:, :HR].reshape(N, HR * WP, C)
    halo = x_pad[:, TJ::TJ]                                          # (N, NB, WP, C)

    w_full = _phase_weight_matrix(weight).astype(cdtype)             # (4C, 4C)
    b_row = jnp.tile(bias, 4).reshape(1, 4 * C).astype(jnp.float32)  # (dy, dx, co)

    kernel = functools.partial(_upsample_band_kernel, m=M, wp=WP, c=C)
    out = pl.pallas_call(
        kernel,
        out_shape=jax.ShapeDtypeStruct((N, HR * WP, 4 * C), out_dtype),
        grid_spec=pltpu.PrefetchScalarGridSpec(
            num_scalar_prefetch=0,
            grid=(N, NB),
            in_specs=[
                # Band-tiled flat image: only TJ padded rows resident per step.
                pl.BlockSpec((1, M, C), lambda n, b: (n, b, 0)),
                # One-row halo just below the band.
                pl.BlockSpec((1, 1, WP, C), lambda n, b: (n, b, 0, 0)),
                pl.BlockSpec((4 * C, 4 * C), lambda n, b: (0, 0)),
                pl.BlockSpec((1, 4 * C), lambda n, b: (0, 0)),
            ],
            out_specs=pl.BlockSpec((1, M, 4 * C), lambda n, b: (n, b, 0)),
            scratch_shapes=[pltpu.VMEM((M, 4 * C), cdtype)],
        ),
        compiler_params=pltpu.CompilerParams(
            # Output blocks are disjoint per (n, b) and all inputs are
            # read-only, so both axes shard cleanly across v7x's TensorCores.
            dimension_semantics=("parallel", "parallel"),
            vmem_limit_bytes=budget,
        ),
    )(x_flat, halo, w_full, b_row)

    # Depth-to-space + NCHW + crop: one fused XLA pass over the output.
    # out[n, j, i, dy, dx, co] is the value of output pixel (2j-1+dy, 2i-1+dx);
    # the garbage column i = W+1 and the padded rows land outside the crop.
    y = out.reshape(N, HR, WP, 2, 2, C)
    y = jnp.transpose(y, (0, 5, 1, 3, 2, 4)).reshape(N, C, 2 * HR, 2 * WP)
    return y[:, :, 1:OH + 1, 1:OW + 1].astype(x.dtype)


if __name__ == "__main__":
    key = jax.random.PRNGKey(0)
    kx, kw, kb = jax.random.split(key, 3)

    N, C, H, W = 2, 4, 16, 16
    x = jax.random.normal(kx, (N, C, H, W), jnp.float32)

    # Same parameter shapes as nn.ConvTranspose2d(C, C, 4, 2, 1).
    fan_in = C * KSIZE * KSIZE
    bound = 1.0 / (fan_in ** 0.5)
    weight = jax.random.uniform(kw, (N * 0 + C, C, KSIZE, KSIZE), jnp.float32, -bound, bound)
    bias = jax.random.uniform(kb, (C,), jnp.float32, -bound, bound)
    t = jnp.zeros((N,), jnp.float32)   # unused time embedding, as in the module

    fwd = jax.jit(upsample_forward)
    y = jax.block_until_ready(fwd(x, weight, bias, t))
    assert y.shape == (N, C, 2 * H, 2 * W), y.shape

    # Reference: XLA dilated conv realizes the same transposed-conv semantics.
    w_ref = jnp.transpose(jnp.flip(weight, (2, 3)), (1, 0, 2, 3))  # OIHW
    ref = jax.lax.conv_general_dilated(
        x, w_ref, window_strides=(1, 1),
        padding=[(KSIZE - 1 - PAD, KSIZE - 1 - PAD)] * 2,
        lhs_dilation=(STRIDE, STRIDE),
        dimension_numbers=("NCHW", "OIHW", "NCHW"),
        precision=jax.lax.Precision.HIGHEST,
    ) + bias[None, :, None, None]
    err = float(jnp.max(jnp.abs(y - ref)))
    assert jnp.allclose(y, ref, atol=1e-4, rtol=1e-4), err

    print("KERNEL_OK")
</pallas_src>

<mosaic_0001>
module attributes {stable_mosaic.version = 11 : i64} {
  func.func @_upsample_band_kernel(%arg0: i32, %arg1: i32, %arg2: memref<1x360x4xf32, #tpu.memory_space<vmem>>, %arg3: memref<1x1x18x4xf32, #tpu.memory_space<vmem>>, %arg4: memref<16x16xf32, #tpu.memory_space<vmem>>, %arg5: memref<1x16xf32, #tpu.memory_space<vmem>>, %arg6: memref<1x360x16xf32, #tpu.memory_space<vmem>>, %arg7: memref<360x16xf32, #tpu.memory_space<vmem>>) attributes {dimension_semantics = [#tpu.dimension_semantics<parallel>, #tpu.dimension_semantics<parallel>], iteration_bounds = array<i64: 2, 1>, scalar_prefetch = 0 : i64, scratch_operands = 1 : i64, tpu.core_type = #tpu.core_type<tc>, window_params = [{transform_indices = @transform_0, window_bounds = array<i64: 1, 360, 4>}, {transform_indices = @transform_1, window_bounds = array<i64: 1, 1, 18, 4>}, {pipeline_mode = #tpu.pipeline_mode<synchronous>, transform_indices = @transform_2, window_bounds = array<i64: 16, 16>}, {pipeline_mode = #tpu.pipeline_mode<synchronous>, transform_indices = @transform_3, window_bounds = array<i64: 1, 16>}, {transform_indices = @transform_4, window_bounds = array<i64: 1, 360, 16>}]} {
    %c0 = arith.constant 0 : index
    %c0_0 = arith.constant 0 : index
    %c0_1 = arith.constant 0 : index
    %c0_2 = arith.constant 0 : index
    %0 = vector.load %arg3[%c0, %c0_0, %c0_1, %c0_2] : memref<1x1x18x4xf32, #tpu.memory_space<vmem>>, vector<1x1x18x4xf32>
    %1 = vector.shape_cast %0 : vector<1x1x18x4xf32> to vector<18x4xf32>
    %c0_3 = arith.constant 0 : index
    %c0_4 = arith.constant 0 : index
    %c0_5 = arith.constant 0 : index
    %2 = vector.load %arg2[%c0_3, %c0_4, %c0_5] : memref<1x360x4xf32, #tpu.memory_space<vmem>>, vector<1x360x4xf32>
    %3 = vector.shape_cast %2 : vector<1x360x4xf32> to vector<360x4xf32>
    %c0_6 = arith.constant 0 : index
    %c0_7 = arith.constant 0 : index
    %4 = vector.load %arg7[%c0_6, %c0_7] : memref<360x16xf32, #tpu.memory_space<vmem>>, vector<360x4xf32>
    tpu.vector_store %arg7[%c0_6, %c0_7], %3 {strides = array<i32>} : memref<360x16xf32, #tpu.memory_space<vmem>>, vector<360x4xf32>,
    %c0_8 = arith.constant 0 : index
    %c1 = arith.constant 1 : index
    %c0_9 = arith.constant 0 : index
    %5 = vector.load %arg2[%c0_8, %c1, %c0_9] : memref<1x360x4xf32, #tpu.memory_space<vmem>>, vector<1x359x4xf32>
    %6 = vector.shape_cast %5 : vector<1x359x4xf32> to vector<359x4xf32>
    %c0_10 = arith.constant 0 : index
    %c4 = arith.constant 4 : index
    %7 = vector.load %arg7[%c0_10, %c4] : memref<360x16xf32, #tpu.memory_space<vmem>>, vector<359x4xf32>
    tpu.vector_store %arg7[%c0_10, %c4], %6 {strides = array<i32>} : memref<360x16xf32, #tpu.memory_space<vmem>>, vector<359x4xf32>,
    %8 = vector.extract_strided_slice %1 {offsets = [0, 0], sizes = [1, 4], strides = [1, 1]} : vector<18x4xf32> to vector<1x4xf32>
    %c359 = arith.constant 359 : index
    %c4_11 = arith.constant 4 : index
    %9 = vector.load %arg7[%c359, %c4_11] : memref<360x16xf32, #tpu.memory_space<vmem>>, vector<1x4xf32>
    tpu.vector_store %arg7[%c359, %c4_11], %8 {strides = array<i32>} : memref<360x16xf32, #tpu.memory_space<vmem>>, vector<1x4xf32>,
    %c0_12 = arith.constant 0 : index
    %c18 = arith.constant 18 : index
    %c0_13 = arith.constant 0 : index
    %10 = vector.load %arg2[%c0_12, %c18, %c0_13] : memref<1x360x4xf32, #tpu.memory_space<vmem>>, vector<1x342x4xf32>
    %11 = vector.shape_cast %10 : vector<1x342x4xf32> to vector<342x4xf32>
    %c0_14 = arith.constant 0 : index
    %c8 = arith.constant 8 : index
    %12 = vector.load %arg7[%c0_14, %c8] : memref<360x16xf32, #tpu.memory_space<vmem>>, vector<342x4xf32>
    tpu.vector_store %arg7[%c0_14, %c8], %11 {strides = array<i32>} : memref<360x16xf32, #tpu.memory_space<vmem>>, vector<342x4xf32>,
    %c342 = arith.constant 342 : index
    %c8_15 = arith.constant 8 : index
    %13 = vector.load %arg7[%c342, %c8_15] : memref<360x16xf32, #tpu.memory_space<vmem>>, vector<18x4xf32>
    tpu.vector_store %arg7[%c342, %c8_15], %1 {strides = array<i32>} : memref<360x16xf32, #tpu.memory_space<vmem>>, vector<18x4xf32>,
    %c0_16 = arith.constant 0 : index
    %c19 = arith.constant 19 : index
    %c0_17 = arith.constant 0 : index
    %14 = vector.load %arg2[%c0_16, %c19, %c0_17] : memref<1x360x4xf32, #tpu.memory_space<vmem>>, vector<1x341x4xf32>
    %15 = vector.shape_cast %14 : vector<1x341x4xf32> to vector<341x4xf32>
    %c0_18 = arith.constant 0 : index
    %c12 = arith.constant 12 : index
    %16 = vector.load %arg7[%c0_18, %c12] : memref<360x16xf32, #tpu.memory_space<vmem>>, vector<341x4xf32>
    tpu.vector_store %arg7[%c0_18, %c12], %15 {strides = array<i32>} : memref<360x16xf32, #tpu.memory_space<vmem>>, vector<341x4xf32>,
    %c341 = arith.constant 341 : index
    %c12_19 = arith.constant 12 : index
    %17 = vector.load %arg7[%c341, %c12_19] : memref<360x16xf32, #tpu.memory_space<vmem>>, vector<18x4xf32>
    tpu.vector_store %arg7[%c341, %c12_19], %1 {strides = array<i32>} : memref<360x16xf32, #tpu.memory_space<vmem>>, vector<18x4xf32>,
    %18 = vector.extract_strided_slice %1 {offsets = [17, 0], sizes = [1, 4], strides = [1, 1]} : vector<18x4xf32> to vector<1x4xf32>
    %c359_20 = arith.constant 359 : index
    %c12_21 = arith.constant 12 : index
    %19 = vector.load %arg7[%c359_20, %c12_21] : memref<360x16xf32, #tpu.memory_space<vmem>>, vector<1x4xf32>
    tpu.vector_store %arg7[%c359_20, %c12_21], %18 {strides = array<i32>} : memref<360x16xf32, #tpu.memory_space<vmem>>, vector<1x4xf32>,
    %c0_22 = arith.constant 0 : index
    %c0_23 = arith.constant 0 : index
    %20 = vector.load %arg7[%c0_22, %c0_23] : memref<360x16xf32, #tpu.memory_space<vmem>>, vector<360x16xf32>
    %c0_24 = arith.constant 0 : index
    %c0_25 = arith.constant 0 : index
    %21 = vector.load %arg4[%c0_24, %c0_25] : memref<16x16xf32, #tpu.memory_space<vmem>>, vector<16x16xf32>
    %cst = arith.constant dense<0.000000e+00> : vector<360x16xf32>
    %22 = tpu.matmul %20, %21, %cst {dimension_numbers = #tpu.dot_dimension_numbers<[1], [0], [0], [1], [0, 0, 1, 1], [], []>} : vector<360x16xf32>, vector<16x16xf32>, vector<360x16xf32> -> vector<360x16xf32>
    %c0_26 = arith.constant 0 : index
    %c0_27 = arith.constant 0 : index
    %23 = vector.load %arg5[%c0_26, %c0_27] : memref<1x16xf32, #tpu.memory_space<vmem>>, vector<1x16xf32>
    %24 = vector.broadcast %23 : vector<1x16xf32> to vector<360x16xf32>
    %25 = arith.addf %22, %24 : vector<360x16xf32>
    %c0_28 = arith.constant 0 : index
    %c0_29 = arith.constant 0 : index
    %c0_30 = arith.constant 0 : index
    %26 = vector.load %arg6[%c0_28, %c0_29, %c0_30] : memref<1x360x16xf32, #tpu.memory_space<vmem>>, vector<1x360x16xf32>
    %27 = vector.shape_cast %26 : vector<1x360x16xf32> to vector<360x16xf32>
    %28 = vector.shape_cast %25 : vector<360x16xf32> to vector<1x360x16xf32>
    tpu.vector_store %arg6[%c0_28, %c0_29, %c0_30], %28 {strides = array<i32>} : memref<1x360x16xf32, #tpu.memory_space<vmem>>, vector<1x360x16xf32>,
    return
  }
  func.func @transform_0(%arg0: i32, %arg1: i32) -> (i32, i32, i32) {
    %c0_i32 = arith.constant 0 : i32
    %c0_i32_0 = arith.constant 0 : i32
    return %arg0, %arg1, %c0_i32 : i32, i32, i32
  }
  func.func @transform_1(%arg0: i32, %arg1: i32) -> (i32, i32, i32, i32) {
    %c0_i32 = arith.constant 0 : i32
    %c0_i32_0 = arith.constant 0 : i32
    %c0_i32_1 = arith.constant 0 : i32
    return %arg0, %arg1, %c0_i32, %c0_i32_0 : i32, i32, i32, i32
  }
  func.func @transform_2(%arg0: i32, %arg1: i32) -> (i32, i32) {
    %c0_i32 = arith.constant 0 : i32
    %c0_i32_0 = arith.constant 0 : i32
    %c0_i32_1 = arith.constant 0 : i32
    return %c0_i32, %c0_i32_0 : i32, i32
  }
  func.func @transform_3(%arg0: i32, %arg1: i32) -> (i32, i32) {
    %c0_i32 = arith.constant 0 : i32
    %c0_i32_0 = arith.constant 0 : i32
    %c0_i32_1 = arith.constant 0 : i32
    return %c0_i32, %c0_i32_0 : i32, i32
  }
  func.func @transform_4(%arg0: i32, %arg1: i32) -> (i32, i32, i32) {
    %c0_i32 = arith.constant 0 : i32
    %c0_i32_0 = arith.constant 0 : i32
    return %arg0, %arg1, %c0_i32 : i32, i32, i32
  }
}

</mosaic_0001>

<bundles_post_ra>
// kernel: tile.9
= control target key start
LH: loop header
LB: loop body
LE: loop exit
PB: predicated region body
PF: predicated region fallthrough
CT: control target
= control target key end

     0   :  { %vm8_vm0 = vcmask 31744   ;;  %s40_s8 = smov 4   ;;  %s41_s9 = smov 8   ;;  %vm14_vm1 = vcmask 130144   ;;  %vm20_vm2 = vcmask 97344   ;;  %vm26_vm3 = vcmask 64544   ;;  %s58_s0 = inlined_call_operand.vmem [shape: f32[4,4], index: 0, kind: input, shape index: {}]   ;;  %s59_s1 = inlined_call_operand.vmem [shape: f32[1,16], index: 1, kind: output, shape index: {}]  }
   0x1   :  { %v5_v0 = vld [vmem:[%s58_s0] sm:$0xf]  ;;  %s39_s0 = smov 12  }
   0x2   :  { %6 = vst [vmem:[#allocation1] sm:$0xf] %v5_v0 }
   0x9   :  { %v11_v1 = vld [vmem:[#allocation1 + $0x3] sm:$0x1]   ;;  %v23_v2 = vld [vmem:[#allocation1 + $0x1] sm:$0x1]   ;;  %v7_v3 = vld [vmem:[#allocation1] sm:$0x1]  }
   0xa   :  { %12 = vrot.lane.b32.xlu0 %v11_v1, %s39_s0  ;;  %24 = vrot.lane.b32.xlu1 %v23_v2, %s40_s8  ;;  %v17_v4 = vld [vmem:[#allocation1 + $0x2] sm:$0x1]   ;;  %9 = vst.msk [vmem:[#allocation0] sm:$0x1] %vm8_vm0, %v7_v3  }
   0xe   :  { %18 = vrot.lane.b32.xlu0 %v17_v4, %s41_s9 }
  0x7c   :  { %v13_v5 = vpop.permute.xlu0 %12   ;;  %v25_v6 = vpop.permute.xlu1 %24  }
  0x7d   :  { %15 = vst.msk [vmem:[#allocation0] sm:$0x1] %vm14_vm1, %v13_v5  }
  0x80   :  { %v19_v7 = vpop.permute.xlu0 %18  }
  0x81   :  { %21 = vst.msk [vmem:[#allocation0] sm:$0x1] %vm20_vm2, %v19_v7  }
  0x82   :  { %27 = vst.msk [vmem:[#allocation0] sm:$0x1] %vm26_vm3, %v25_v6  }
  0x89   :  { %v32_v8 = vld [vmem:[#allocation0] sm:$0x1] }
  0x8a   :  { %35 = vst [vmem:[%s59_s1] sm:$0x1] %v32_v8 }

// kernel: tile.8
= control target key start
LH: loop header
LB: loop body
LE: loop exit
PB: predicated region body
PF: predicated region fallthrough
CT: control target
= control target key end

     0   :  { %2 = vsyncpa [#allocation1], 0  ;;  %s42_s6 = smov [#allocation0]   ;;  %s59_s0 = inlined_call_operand.hbm [shape: f32[4], index: 0, kind: input, shape index: {}]   ;;  %s60_s1 = inlined_call_operand.vmem [shape: f32[4,4], index: 1, kind: output, shape index: {}]  }
   0x1   :  { %s9_s7 = sshll.u32 %s42_s6, 4  ;;  %s10_s7 = int_to_ptr.vmem [resolvable:$true] %s9_s7 }
   0x2   :  { %s28_s8 = scalar_lea.vmem %s10_s7, 16  ;;  %s32_s9 = scalar_lea.vmem %s10_s7, 32 }
   0x3   :  { %p29_p0 = scmp.ne.s32.totalorder %s10_s7, %s28_s8  ;;  %p33_p1 = scmp.lt.s32.totalorder %s10_s7, %s10_s7 }
   0x4   :  { %p34_p2 = scmp.lt.s32.totalorder %s32_s9, %s28_s8 }
   0x6   :  { %p35_p3 = por %p34_p2, %p33_p1 }
   0x8   :  { %p36_p4 = pnand %p35_p3, %p29_p0 }
   0xa   :  { %39 = shalt.err (!%p36_p4)
}
   0xb   :  { %12 = dma.hbm_to_vmem [thread:$0]  %s59_s0, 16, %s10_s7, [#allocation1]  }
   0xc   :  { %40 = dma.done.wait [#allocation1], 16  }
   0xd   :  { %41 = vsyncadd [#allocation1], 4294967280  ;;  %v16_v0 = vld [vmem:[#allocation0] ss:$0 sm:$0xff] }
   0xe   :  { %17 = vst [vmem:[%s60_s1] sm:$0xf] %v16_v0 }
   0xf   :  { %18 = vsyncpa [#allocation1], 1 }

// kernel: upsample_forward.1
= control target key start
LH: loop header
LB: loop body
LE: loop exit
PB: predicated region body
PF: predicated region fallthrough
CT: control target
= control target key end

     0   :  { %s2157_s15 = smov 0   ;;  %s2159_s16 = smov 0   ;;  %s2986_s0 = inlined_call_operand.vmem [shape: f32[2,360,4], index: 0, kind: input, shape index: {}]   ;;  %s2987_s1 = inlined_call_operand.vmem [shape: f32[2,1,18,4], index: 1, kind: input, shape index: {}]   ;;  %s2988_s2 = inlined_call_operand.vmem [shape: f32[16,16], index: 2, kind: input, shape index: {}]   ;;  %s2989_s3 = inlined_call_operand.vmem [shape: f32[1,16], index: 3, kind: input, shape index: {}]   ;;  %s2990_s4 = inlined_call_operand.vmem [shape: f32[2,360,16], index: 4, kind: output, shape index: {}]  }
   0x1   :  { %s2161_s17 = smov 0  }
   0x2 LB: > { %s26_s18 = sadd.s32 1, %s2121_s16  ;;  %p1830_p0 = scmp.ge.s32.totalorder %s2125_s17, 1  ;;  %s2125_s17 = sphi %s2161_s17, %s14_s17   ;;  %s2121_s16 = sphi %s2159_s16, %s2992_s16   ;;  %s2117_s15 = sphi %s2157_s15, %s2991_s15  }
   0x3   : > { %p28_p1 = scmp.ge.s32.totalorder %s26_s18, 2  ;;  %p199_p2 = scmp.lt.s32.totalorder %s2125_s17, 3 }
   0x5   : > { %s2994_s18 = smov (%p28_p1, %s26_s18), 0  ;;  %p200_p3 = pnand %p1830_p0, %p199_p2 }
   0x6   : > { %p243_p4 = scmp.lt.s32.totalorder (!%p200_p3), %s2117_s15, 1  ;;  %s2129_s27 = smov (!%p200_p3), 12  }
   0x7   : > { %203 = sbr.rel (%p200_p3) target bundleno = 610 (0x262), region = 36  ;;  %s2130_s28 = smov (!%p200_p3), 4  }
   0x8   : > { %s2131_s29 = smov (!%p200_p3), 8  }
   0xc   : > { %s2996_s15 = smov (!%p243_p4, %s2117_s15), 1  ;;  %v2127_v0 = vmov 0.0   ;;  %v1239_v1 = vld [vmem:[%s2988_s2 + $0x8] sm:$0xff]  ;;  %v1238_v2 = vld [vmem:[%s2988_s2] sm:$0xff]  ;;  %vm2128_vm0 = vmmov 0   ;;  %vm319_vm1 = vcmask 31744  }
   0xd   : > { %s2072_s19 = smul.u32 360, %s2996_s15  ;;  %1929 = vmatprep.subr.mxu0 %v2127_v0  ;;  %2068 = vmatprep.subr.mxu1 %v2127_v0  ;;  %vm590_vm2 = vcmask 64544   ;;  %vm858_vm3 = vcmask 97344   ;;  %vm1133_vm4 = vcmask 130144   ;;  %vm1247_vm5 = vcmask 130048  }
   0xe   : > { %1930 = vmatpush3.msra.mxu0 %v1239_v1  ;;  %2070 = vmatpush3.msra.mxu1 %v1239_v1  ;;  %s2073_s30 = smul.u32 24, %s2996_s15  ;;  %vm901_vm6 = vcmask 95296   ;;  %vm1176_vm7 = vcmask 127072   ;;  %vm635_vm8 = vcmask 63520   ;;  %vm641_vm9 = vcmask 57376  }
   0xf   : > { %s2188_s24 = scalar_lea.vmem %s2986_s0, %s2072_s19  ;;  %1931 = vmatprep.subr.mxu0 %v2127_v0  ;;  %2069 = vmatprep.subr.mxu1 %v2127_v0  ;;  %s2780_s12 = scalar_lea.vmem %s2990_s4, %s2072_s19  ;;  %vm916_vm10 = vcmask 91200   ;;  %vm1189_vm11 = vcmask 124000   ;;  %vm1191_vm12 = vcmask 124001  }
  0x10   : > { %v918_v3 = vld [vmem:[%s2188_s24 + $0x13] sm:$0xff]  ;;  %v365_v4 = vld [vmem:[%s2188_s24 + $0x1] sm:$0xff]  ;;  %1932 = vmatpush3.msra.mxu0 %v1238_v2  ;;  %1933 = vmatprep.mubr.msk.f32.mxu0 %vm2128_vm0, %v2127_v0  ;;  %v366_v5 = vld [vmem:[%s2188_s24 + $0x9] sm:$0xff]  ;;  %s2648_s7 = scalar_lea.vmem %s2987_s1, %s2073_s30 }
  0x11   : > { %1004 = vrot.lane.b32.xlu1 %v918_v3, %s2129_s27  ;;  %455 = vrot.lane.b32.xlu0 %v365_v4, %s2130_s28  ;;  %v643_v6 = vld [vmem:[%s2188_s24 + $0x12] sm:$0xff]  ;;  %v644_v7 = vld [vmem:[%s2188_s24 + $0x1a] sm:$0xff] }
  0x12   : > { %2071 = vmatpush3.msra.mxu1 %v1238_v2  ;;  %2002 = vmatprep.mubr.msk.f32.mxu1 %vm2128_vm0, %v2127_v0  ;;  %v388_v8 = vld [vmem:[%s2188_s24 + $0xb9] sm:$0xff]  ;;  %v666_v10 = vld [vmem:[%s2188_s24 + $0xca] sm:$0xff]  ;;  %v645_v13 = vld [vmem:[%s2188_s24 + $0x22] sm:$0xff] }
  0x13   : > { %v919_v9 = vld [vmem:[%s2188_s24 + $0x1b] sm:$0xff]  ;;  %v367_v11 = vld [vmem:[%s2188_s24 + $0x11] sm:$0xff]  ;;  %v920_v16 = vld [vmem:[%s2188_s24 + $0x23] sm:$0xff] }
  0x14   : > { %v941_v12 = vld [vmem:[%s2188_s24 + $0xcb] sm:$0xff]  ;;  %v389_v14 = vld [vmem:[%s2188_s24 + $0xc1] sm:$0xff]  ;;  %v297_v19 = vld [vmem:[%s2188_s24 + $0xb8] sm:$0xff] }
  0x15   : > { %457 = vrot.lane.b32.xlu1 %v366_v5, %s2130_s28  ;;  %729 = vrot.lane.b32.xlu0 %v643_v6, %s2131_s29  ;;  %v274_v15 = vld [vmem:[%s2188_s24] sm:$0xff]  ;;  %v667_v17 = vld [vmem:[%s2188_s24 + $0xd2] sm:$0xff]  ;;  %343 = vst.msk [vmem:[#allocation2 + $0xb8] sm:$0xff] %vm319_vm1, %v297_v19 }
  0x16   : > { %320 = vst.msk [vmem:[#allocation2] sm:$0xff] %vm319_vm1, %v274_v15  ;;  %v275_v18 = vld [vmem:[%s2188_s24 + $0x8] sm:$0xff]  ;;  %v276_v20 = vld [vmem:[%s2188_s24 + $0x10] sm:$0xff]  ;;  %v368_v21 = vld [vmem:[%s2188_s24 + $0x19] sm:$0xff] }
  0x17   : > { %321 = vst.msk [vmem:[#allocation2 + $0x8] sm:$0xff] %vm319_vm1, %v275_v18  ;;  %v942_v22 = vld [vmem:[%s2188_s24 + $0xd3] sm:$0xff]  ;;  %322 = vst.msk [vmem:[#allocation2 + $0x10] sm:$0xff] %vm319_vm1, %v276_v20  ;;  %v298_v23 = vld [vmem:[%s2188_s24 + $0xc0] sm:$0xff] }
  0x18   : > { %344 = vst.msk [vmem:[#allocation2 + $0xc0] sm:$0xff] %vm319_vm1, %v298_v23  ;;  %v277_v24 = vld [vmem:[%s2188_s24 + $0x18] sm:$0xff]  ;;  %v299_v25 = vld [vmem:[%s2188_s24 + $0xc8] sm:$0xff]  ;;  %v278_v28 = vld [vmem:[%s2188_s24 + $0x20] sm:$0xff] }
  0x19   : > { %731 = vrot.lane.b32.xlu1 %v644_v7, %s2131_s29  ;;  %501 = vrot.lane.b32.xlu0 %v388_v8, %s2130_s28  ;;  %323 = vst.msk [vmem:[#allocation2 + $0x18] sm:$0xff] %vm319_vm1, %v277_v24  ;;  %v646_v26 = vld [vmem:[%s2188_s24 + $0x2a] sm:$0xff]  ;;  %345 = vst.msk [vmem:[#allocation2 + $0xc8] sm:$0xff] %vm319_vm1, %v299_v25  ;;  %v668_v31 = vld [vmem:[%s2188_s24 + $0xda] sm:$0xff] }
  0x1a   : > { %v390_v27 = vld [vmem:[%s2188_s24 + $0xc9] sm:$0xff]  ;;  %324 = vst.msk [vmem:[#allocation2 + $0x20] sm:$0xff] %vm319_vm1, %v278_v28  ;;  %v369_v32 = vld [vmem:[%s2188_s24 + $0x21] sm:$0xff]  ;;  %v647_v35 = vld [vmem:[%s2188_s24 + $0x32] sm:$0xff] }
  0x1b   : > { %v300_v29 = vld [vmem:[%s2188_s24 + $0xd0] sm:$0xff]  ;;  %v943_v33 = vld [vmem:[%s2188_s24 + $0xdb] sm:$0xff]  ;;  %v279_v34 = vld [vmem:[%s2188_s24 + $0x28] sm:$0xff] }
  0x1c   : > { %346 = vst.msk [vmem:[#allocation2 + $0xd0] sm:$0xff] %vm319_vm1, %v300_v29  ;;  %v921_v30 = vld [vmem:[%s2188_s24 + $0x2b] sm:$0xff]  ;;  %325 = vst.msk [vmem:[#allocation2 + $0x28] sm:$0xff] %vm319_vm1, %v279_v34  ;;  %v301_v37 = vld [vmem:[%s2188_s24 + $0xd8] sm:$0xff] }
  0x1d   : > { %1006 = vrot.lane.b32.xlu1 %v919_v9, %s2129_s27  ;;  %775 = vrot.lane.b32.xlu0 %v666_v10, %s2131_s29  ;;  %v391_v36 = vld [vmem:[%s2188_s24 + $0xd1] sm:$0xff]  ;;  %347 = vst.msk [vmem:[#allocation2 + $0xd8] sm:$0xff] %vm319_vm1, %v301_v37  ;;  %v669_v39 = vld [vmem:[%s2188_s24 + $0xe2] sm:$0xff] }
  0x1e   : > { %v922_v38 = vld [vmem:[%s2188_s24 + $0x33] sm:$0xff]  ;;  %v370_v40 = vld [vmem:[%s2188_s24 + $0x29] sm:$0xff]  ;;  %v302_v45 = vld [vmem:[%s2188_s24 + $0xe0] sm:$0xff] }
  0x1f   : > { %v944_v41 = vld [vmem:[%s2188_s24 + $0xe3] sm:$0xff]  ;;  %v280_v42 = vld [vmem:[%s2188_s24 + $0x30] sm:$0xff]  ;;  %v648_v43 = vld [vmem:[%s2188_s24 + $0x3a] sm:$0xff]  ;;  %348 = vst.msk [vmem:[#allocation2 + $0xe0] sm:$0xff] %vm319_vm1, %v302_v45 }
  0x20   : > { %326 = vst.msk [vmem:[#allocation2 + $0x30] sm:$0xff] %vm319_vm1, %v280_v42  ;;  %v392_v44 = vld [vmem:[%s2188_s24 + $0xd9] sm:$0xff]  ;;  %v670_v47 = vld [vmem:[%s2188_s24 + $0xea] sm:$0xff]  ;;  %v649_v51 = vld [vmem:[%s2188_s24 + $0x42] sm:$0xff] }
  0x21   : > { %459 = vrot.lane.b32.xlu1 %v367_v11, %s2130_s28  ;;  %1050 = vrot.lane.b32.xlu0 %v941_v12, %s2129_s27  ;;  %v923_v46 = vld [vmem:[%s2188_s24 + $0x3b] sm:$0xff]  ;;  %v371_v48 = vld [vmem:[%s2188_s24 + $0x31] sm:$0xff] }
  0x22   : > { %v945_v49 = vld [vmem:[%s2188_s24 + $0xeb] sm:$0xff]  ;;  %v281_v50 = vld [vmem:[%s2188_s24 + $0x38] sm:$0xff]  ;;  %v393_v52 = vld [vmem:[%s2188_s24 + $0xe1] sm:$0xff] }
  0x23   : > { %327 = vst.msk [vmem:[#allocation2 + $0x38] sm:$0xff] %vm319_vm1, %v281_v50  ;;  %v303_v53 = vld [vmem:[%s2188_s24 + $0xe8] sm:$0xff]  ;;  %v671_v55 = vld [vmem:[%s2188_s24 + $0xf2] sm:$0xff]  ;;  %v282_v58 = vld [vmem:[%s2188_s24 + $0x40] sm:$0xff] }
  0x24   : > { %349 = vst.msk [vmem:[#allocation2 + $0xe8] sm:$0xff] %vm319_vm1, %v303_v53  ;;  %v924_v54 = vld [vmem:[%s2188_s24 + $0x43] sm:$0xff]  ;;  %v372_v56 = vld [vmem:[%s2188_s24 + $0x39] sm:$0xff]  ;;  %328 = vst.msk [vmem:[#allocation2 + $0x40] sm:$0xff] %vm319_vm1, %v282_v58 }
  0x25   : > { %733 = vrot.lane.b32.xlu1 %v645_v13, %s2131_s29  ;;  %503 = vrot.lane.b32.xlu0 %v389_v14, %s2130_s28  ;;  %v946_v57 = vld [vmem:[%s2188_s24 + $0xf3] sm:$0xff]  ;;  %v650_v59 = vld [vmem:[%s2188_s24 + $0x4a] sm:$0xff] }
  0x26   : > { %v394_v60 = vld [vmem:[%s2188_s24 + $0xe9] sm:$0xff]  ;;  %v672_v63 = vld [vmem:[%s2188_s24 + $0xfa] sm:$0xff]  ;;  %v651_v4 = vld [vmem:[%s2188_s24 + $0x52] sm:$0xff] }
  0x27   : > { %v304_v61 = vld [vmem:[%s2188_s24 + $0xf0] sm:$0xff]  ;;  %v373_v1 = vld [vmem:[%s2188_s24 + $0x41] sm:$0xff]  ;;  %v305_v6 = vld [vmem:[%s2188_s24 + $0xf8] sm:$0xff] }
  0x28   : > { %350 = vst.msk [vmem:[#allocation2 + $0xf0] sm:$0xff] %vm319_vm1, %v304_v61  ;;  %v925_v62 = vld [vmem:[%s2188_s24 + $0x4b] sm:$0xff]  ;;  %v947_v2 = vld [vmem:[%s2188_s24 + $0xfb] sm:$0xff]  ;;  %351 = vst.msk [vmem:[#allocation2 + $0xf8] sm:$0xff] %vm319_vm1, %v305_v6 }
  0x29   : > { %1008 = vrot.lane.b32.xlu1 %v920_v16, %s2129_s27  ;;  %777 = vrot.lane.b32.xlu0 %v667_v17, %s2131_s29  ;;  %v283_v3 = vld [vmem:[%s2188_s24 + $0x48] sm:$0xff]  ;;  %v395_v5 = vld [vmem:[%s2188_s24 + $0xf1] sm:$0xff] }
  0x2a   : > { %329 = vst.msk [vmem:[#allocation2 + $0x48] sm:$0xff] %vm319_vm1, %v283_v3  ;;  %v926_v7 = vld [vmem:[%s2188_s24 + $0x53] sm:$0xff]  ;;  %v673_v8 = vld [vmem:[%s2188_s24 + $0x102] sm:$0xff]  ;;  %v674_v16 = vld [vmem:[%s2188_s24 + $0x10a] sm:$0xff] }
  0x2b   : > { %v374_v9 = vld [vmem:[%s2188_s24 + $0x49] sm:$0xff]  ;;  %v652_v12 = vld [vmem:[%s2188_s24 + $0x5a] sm:$0xff]  ;;  %v375_v17 = vld [vmem:[%s2188_s24 + $0x51] sm:$0xff] }
  0x2c   : > { %v948_v10 = vld [vmem:[%s2188_s24 + $0x103] sm:$0xff]  ;;  %v284_v11 = vld [vmem:[%s2188_s24 + $0x50] sm:$0xff]  ;;  %v396_v13 = vld [vmem:[%s2188_s24 + $0xf9] sm:$0xff] }
  0x2d   : > { %461 = vrot.lane.b32.xlu1 %v368_v21, %s2130_s28  ;;  %1052 = vrot.lane.b32.xlu0 %v942_v22, %s2129_s27  ;;  %330 = vst.msk [vmem:[#allocation2 + $0x50] sm:$0xff] %vm319_vm1, %v284_v11  ;;  %v306_v14 = vld [vmem:[%s2188_s24 + $0x100] sm:$0xff]  ;;  %v949_v18 = vld [vmem:[%s2188_s24 + $0x10b] sm:$0xff] }
  0x2e   : > { %352 = vst.msk [vmem:[#allocation2 + $0x100] sm:$0xff] %vm319_vm1, %v306_v14  ;;  %v927_v15 = vld [vmem:[%s2188_s24 + $0x5b] sm:$0xff]  ;;  %v307_v24 = vld [vmem:[%s2188_s24 + $0x108] sm:$0xff]  ;;  %v655_v50 = vld [vmem:[%s2188_s24 + $0x72] sm:$0xff] }
  0x2f   : > { %v285_v19 = vld [vmem:[%s2188_s24 + $0x58] sm:$0xff]  ;;  %v653_v20 = vld [vmem:[%s2188_s24 + $0x62] sm:$0xff]  ;;  %353 = vst.msk [vmem:[#allocation2 + $0x108] sm:$0xff] %vm319_vm1, %v307_v24  ;;  %v654_v34 = vld [vmem:[%s2188_s24 + $0x6a] sm:$0xff] }
  0x30   : > { %331 = vst.msk [vmem:[#allocation2 + $0x58] sm:$0xff] %vm319_vm1, %v285_v19  ;;  %v397_v21 = vld [vmem:[%s2188_s24 + $0x101] sm:$0xff]  ;;  %v376_v29 = vld [vmem:[%s2188_s24 + $0x59] sm:$0xff]  ;;  %v953_v14 = vld [vmem:[%s2188_s24 + $0x12b] sm:$0xff] }
  0x31   : > { %735 = vrot.lane.b32.xlu1 %v646_v26, %s2131_s29  ;;  %505 = vrot.lane.b32.xlu0 %v390_v27, %s2130_s28  ;;  %v928_v25 = vld [vmem:[%s2188_s24 + $0x63] sm:$0xff]  ;;  %v675_v26 = vld [vmem:[%s2188_s24 + $0x112] sm:$0xff] }
  0x32   : > { %v951_v45 = vld [vmem:[%s2188_s24 + $0x11b] sm:$0xff]  ;;  %v952_v61 = vld [vmem:[%s2188_s24 + $0x123] sm:$0xff] }
  0x33   : > { %v656_v3 = vld [vmem:[%s2188_s24 + $0x7a] sm:$0xff]  ;;  %v657_v19 = vld [vmem:[%s2188_s24 + $0x82] sm:$0xff] }
  0x34   : > { %v311_v24 = vld [vmem:[%s2188_s24 + $0x128] sm:$0xff] }
  0x35   : > { %1010 = vrot.lane.b32.xlu1 %v921_v30, %s2129_s27  ;;  %779 = vrot.lane.b32.xlu0 %v668_v31, %s2131_s29  ;;  %v950_v30 = vld [vmem:[%s2188_s24 + $0x113] sm:$0xff]  ;;  %357 = vst.msk [vmem:[#allocation2 + $0x128] sm:$0xff] %vm319_vm1, %v311_v24 }
  0x39   : > { %463 = vrot.lane.b32.xlu1 %v369_v32, %s2130_s28  ;;  %1054 = vrot.lane.b32.xlu0 %v943_v33, %s2129_s27  ;;  %v286_v33 = vld [vmem:[%s2188_s24 + $0x60] sm:$0xff] }
  0x3a   : > { %332 = vst.msk [vmem:[#allocation2 + $0x60] sm:$0xff] %vm319_vm1, %v286_v33 }
  0x3d   : > { %737 = vrot.lane.b32.xlu1 %v647_v35, %s2131_s29  ;;  %507 = vrot.lane.b32.xlu0 %v391_v36, %s2130_s28  ;;  %v398_v35 = vld [vmem:[%s2188_s24 + $0x109] sm:$0xff] }
  0x41   : > { %1012 = vrot.lane.b32.xlu1 %v922_v38, %s2129_s27  ;;  %781 = vrot.lane.b32.xlu0 %v669_v39, %s2131_s29  ;;  %v308_v38 = vld [vmem:[%s2188_s24 + $0x110] sm:$0xff] }
  0x42   : > { %354 = vst.msk [vmem:[#allocation2 + $0x110] sm:$0xff] %vm319_vm1, %v308_v38 }
  0x45   : > { %465 = vrot.lane.b32.xlu1 %v370_v40, %s2130_s28  ;;  %1056 = vrot.lane.b32.xlu0 %v944_v41, %s2129_s27  ;;  %v929_v40 = vld [vmem:[%s2188_s24 + $0x6b] sm:$0xff]  ;;  %v676_v41 = vld [vmem:[%s2188_s24 + $0x11a] sm:$0xff] }
  0x49   : > { %739 = vrot.lane.b32.xlu1 %v648_v43, %s2131_s29  ;;  %509 = vrot.lane.b32.xlu0 %v392_v44, %s2130_s28  ;;  %v377_v44 = vld [vmem:[%s2188_s24 + $0x61] sm:$0xff] }
  0x4d   : > { %1014 = vrot.lane.b32.xlu1 %v923_v46, %s2129_s27  ;;  %783 = vrot.lane.b32.xlu0 %v670_v47, %s2131_s29 }
  0x51   : > { %467 = vrot.lane.b32.xlu1 %v371_v48, %s2130_s28  ;;  %1058 = vrot.lane.b32.xlu0 %v945_v49, %s2129_s27  ;;  %v287_v49 = vld [vmem:[%s2188_s24 + $0x68] sm:$0xff] }
  0x52   : > { %333 = vst.msk [vmem:[#allocation2 + $0x68] sm:$0xff] %vm319_vm1, %v287_v49 }
  0x55   : > { %741 = vrot.lane.b32.xlu1 %v649_v51, %s2131_s29  ;;  %511 = vrot.lane.b32.xlu0 %v393_v52, %s2130_s28  ;;  %v399_v51 = vld [vmem:[%s2188_s24 + $0x111] sm:$0xff] }
  0x59   : > { %1016 = vrot.lane.b32.xlu1 %v924_v54, %s2129_s27  ;;  %785 = vrot.lane.b32.xlu0 %v671_v55, %s2131_s29  ;;  %v309_v55 = vld [vmem:[%s2188_s24 + $0x118] sm:$0xff] }
  0x5a   : > { %355 = vst.msk [vmem:[#allocation2 + $0x118] sm:$0xff] %vm319_vm1, %v309_v55 }
  0x5d   : > { %469 = vrot.lane.b32.xlu1 %v372_v56, %s2130_s28  ;;  %1060 = vrot.lane.b32.xlu0 %v946_v57, %s2129_s27  ;;  %v930_v56 = vld [vmem:[%s2188_s24 + $0x73] sm:$0xff]  ;;  %v677_v57 = vld [vmem:[%s2188_s24 + $0x122] sm:$0xff] }
  0x61   : > { %743 = vrot.lane.b32.xlu1 %v650_v59, %s2131_s29  ;;  %513 = vrot.lane.b32.xlu0 %v394_v60, %s2130_s28  ;;  %v378_v60 = vld [vmem:[%s2188_s24 + $0x69] sm:$0xff] }
  0x65   : > { %1018 = vrot.lane.b32.xlu1 %v925_v62, %s2129_s27  ;;  %787 = vrot.lane.b32.xlu0 %v672_v63, %s2131_s29 }
  0x69   : > { %471 = vrot.lane.b32.xlu1 %v373_v1, %s2130_s28  ;;  %1062 = vrot.lane.b32.xlu0 %v947_v2, %s2129_s27  ;;  %v288_v2 = vld [vmem:[%s2188_s24 + $0x70] sm:$0xff] }
  0x6a   : > { %334 = vst.msk [vmem:[#allocation2 + $0x70] sm:$0xff] %vm319_vm1, %v288_v2 }
  0x6d   : > { %745 = vrot.lane.b32.xlu1 %v651_v4, %s2131_s29  ;;  %515 = vrot.lane.b32.xlu0 %v395_v5, %s2130_s28  ;;  %v400_v4 = vld [vmem:[%s2188_s24 + $0x119] sm:$0xff] }
  0x71   : > { %1020 = vrot.lane.b32.xlu1 %v926_v7, %s2129_s27  ;;  %789 = vrot.lane.b32.xlu0 %v673_v8, %s2131_s29  ;;  %v310_v8 = vld [vmem:[%s2188_s24 + $0x120] sm:$0xff] }
  0x72   : > { %356 = vst.msk [vmem:[#allocation2 + $0x120] sm:$0xff] %vm319_vm1, %v310_v8 }
  0x75   : > { %473 = vrot.lane.b32.xlu1 %v374_v9, %s2130_s28  ;;  %1064 = vrot.lane.b32.xlu0 %v948_v10, %s2129_s27  ;;  %v931_v9 = vld [vmem:[%s2188_s24 + $0x7b] sm:$0xff]  ;;  %v678_v10 = vld [vmem:[%s2188_s24 + $0x12a] sm:$0xff] }
  0x79   : > { %747 = vrot.lane.b32.xlu1 %v652_v12, %s2131_s29  ;;  %517 = vrot.lane.b32.xlu0 %v396_v13, %s2130_s28  ;;  %v379_v13 = vld [vmem:[%s2188_s24 + $0x71] sm:$0xff] }
  0x7d   : > { %1022 = vrot.lane.b32.xlu1 %v927_v15, %s2129_s27  ;;  %791 = vrot.lane.b32.xlu0 %v674_v16, %s2131_s29 }
  0x81   : > { %475 = vrot.lane.b32.xlu1 %v375_v17, %s2130_s28  ;;  %1066 = vrot.lane.b32.xlu0 %v949_v18, %s2129_s27  ;;  %v289_v18 = vld [vmem:[%s2188_s24 + $0x78] sm:$0xff] }
  0x82   : > { %335 = vst.msk [vmem:[#allocation2 + $0x78] sm:$0xff] %vm319_vm1, %v289_v18 }
  0x83   : > { %v1005_v22 = vpop.permute.xlu1 %1004  ;;  %v456_v23 = vpop.permute.xlu0 %455 }
  0x84   : > { %591 = vst.msk [vmem:[#allocation2] sm:$0xff] %vm590_vm2, %v456_v23 }
  0x85   : > { %749 = vrot.lane.b32.xlu1 %v653_v20, %s2131_s29  ;;  %519 = vrot.lane.b32.xlu0 %v397_v21, %s2130_s28  ;;  %v401_v20 = vld [vmem:[%s2188_s24 + $0x121] sm:$0xff] }
  0x87   : > { %v458_v27 = vpop.permute.xlu1 %457  ;;  %v730_v28 = vpop.permute.xlu0 %729 }
  0x88   : > { %592 = vst.msk [vmem:[#allocation2 + $0x8] sm:$0xff] %vm590_vm2, %v458_v27 }
  0x89   : > { %859 = vst.msk [vmem:[#allocation2] sm:$0xff] %vm858_vm3, %v730_v28  ;;  %1024 = vrot.lane.b32.xlu1 %v928_v25, %s2129_s27  ;;  %793 = vrot.lane.b32.xlu0 %v675_v26, %s2131_s29  ;;  %v932_v25 = vld [vmem:[%s2188_s24 + $0x83] sm:$0xff]  ;;  %v679_v26 = vld [vmem:[%s2188_s24 + $0x132] sm:$0xff] }
  0x8a   : > { %1134 = vst.msk [vmem:[#allocation2] sm:$0xff] %vm1133_vm4, %v1005_v22 }
  0x8b   : > { %v732_v31 = vpop.permute.xlu1 %731  ;;  %v502_v32 = vpop.permute.xlu0 %501 }
  0x8c   : > { %860 = vst.msk [vmem:[#allocation2 + $0x8] sm:$0xff] %vm858_vm3, %v732_v31 }
  0x8d   : > { %614 = vst.msk [vmem:[#allocation2 + $0xb8] sm:$0xff] %vm590_vm2, %v502_v32  ;;  %477 = vrot.lane.b32.xlu1 %v376_v29, %s2130_s28  ;;  %1068 = vrot.lane.b32.xlu0 %v950_v30, %s2129_s27  ;;  %v380_v29 = vld [vmem:[%s2188_s24 + $0x79] sm:$0xff] }
  0x8e   : > { %v954_v30 = vld [vmem:[%s2188_s24 + $0x133] sm:$0xff] }
  0x8f   : > { %v1007_v36 = vpop.permute.xlu1 %1006  ;;  %v776_v37 = vpop.permute.xlu0 %775 }
  0x90   : > { %1135 = vst.msk [vmem:[#allocation2 + $0x8] sm:$0xff] %vm1133_vm4, %v1007_v36  ;;  %v402_v36 = vld [vmem:[%s2188_s24 + $0x129] sm:$0xff] }
  0x91   : > { %882 = vst.msk [vmem:[#allocation2 + $0xb8] sm:$0xff] %vm858_vm3, %v776_v37  ;;  %v1193_v39 = vld [vmem:[#allocation2] sm:$0xff]  ;;  %751 = vrot.lane.b32.xlu1 %v654_v34, %s2131_s29  ;;  %521 = vrot.lane.b32.xlu0 %v398_v35, %s2130_s28  ;;  %v658_v35 = vld [vmem:[%s2188_s24 + $0x8a] sm:$0xff] }
  0x92   : > { %1934 = vmatmul.mubr.msk.f32.vlgmr.msra.gmra.mxu0 %vm1247_vm5, %v1193_v39  ;;  %v290_v34 = vld [vmem:[%s2188_s24 + $0x80] sm:$0xff] }
  0x93   : > { %v460_v42 = vpop.permute.xlu1 %459  ;;  %v1051_v43 = vpop.permute.xlu0 %1050  ;;  %1936 = vmatprep.mubr.msk.f32.mxu0 %vm2128_vm0, %v2127_v0  ;;  %336 = vst.msk [vmem:[#allocation2 + $0x80] sm:$0xff] %vm319_vm1, %v290_v34 }
  0x94   : > { %593 = vst.msk [vmem:[#allocation2 + $0x10] sm:$0xff] %vm590_vm2, %v460_v42  ;;  %v680_v42 = vld [vmem:[%s2188_s24 + $0x13a] sm:$0xff] }
  0x95   : > { %1157 = vst.msk [vmem:[#allocation2 + $0xb8] sm:$0xff] %vm1133_vm4, %v1051_v43  ;;  %1026 = vrot.lane.b32.xlu1 %v929_v40, %s2129_s27  ;;  %795 = vrot.lane.b32.xlu0 %v676_v41, %s2131_s29  ;;  %v312_v40 = vld [vmem:[%s2188_s24 + $0x130] sm:$0xff] }
  0x96   : > { %358 = vst.msk [vmem:[#allocation2 + $0x130] sm:$0xff] %vm319_vm1, %v312_v40  ;;  %v933_v41 = vld [vmem:[%s2188_s24 + $0x8b] sm:$0xff] }
  0x97   : > { %v734_v46 = vpop.permute.xlu1 %733  ;;  %v504_v47 = vpop.permute.xlu0 %503  ;;  %v1194_v48 = vld [vmem:[#allocation2 + $0x8] sm:$0xff] }
  0x98   : > { %861 = vst.msk [vmem:[#allocation2 + $0x10] sm:$0xff] %vm858_vm3, %v734_v46  ;;  %1937 = vmatmul.mubr.msk.f32.gmra.mxu0 %vm1247_vm5, %v1194_v48  ;;  %v955_v46 = vld [vmem:[%s2188_s24 + $0x13b] sm:$0xff] }
  0x99   : > { %615 = vst.msk [vmem:[#allocation2 + $0xc0] sm:$0xff] %vm590_vm2, %v504_v47  ;;  %479 = vrot.lane.b32.xlu1 %v377_v44, %s2130_s28  ;;  %1070 = vrot.lane.b32.xlu0 %v951_v45, %s2129_s27  ;;  %v381_v45 = vld [vmem:[%s2188_s24 + $0x81] sm:$0xff] }
  0x9a   : > { %1939 = vmatprep.mubr.msk.f32.mxu0 %vm2128_vm0, %v2127_v0 }
  0x9b   : > { %v1009_v52 = vpop.permute.xlu1 %1008  ;;  %v778_v53 = vpop.permute.xlu0 %777 }
  0x9c   : > { %v1216_v54 = vld [vmem:[#allocation2 + $0xb8] sm:$0xff]  ;;  %1136 = vst.msk [vmem:[#allocation2 + $0x10] sm:$0xff] %vm1133_vm4, %v1009_v52 }
  0x9d   : > { %883 = vst.msk [vmem:[#allocation2 + $0xc0] sm:$0xff] %vm858_vm3, %v778_v53  ;;  %2003 = vmatmul.mubr.msk.f32.vlgmr.msra.gmra.mxu1 %vm1247_vm5, %v1216_v54  ;;  %753 = vrot.lane.b32.xlu1 %v655_v50, %s2131_s29  ;;  %v291_v50 = vld [vmem:[%s2188_s24 + $0x88] sm:$0xff]  ;;  %v403_v52 = vld [vmem:[%s2188_s24 + $0x131] sm:$0xff] }
  0x9e   : > { %523 = vrot.lane.b32.xlu0 %v399_v51, %s2130_s28  ;;  %2005 = vmatprep.mubr.msk.f32.mxu1 %vm2128_vm0, %v2127_v0  ;;  %337 = vst.msk [vmem:[#allocation2 + $0x88] sm:$0xff] %vm319_vm1, %v291_v50  ;;  %v659_v51 = vld [vmem:[%s2188_s24 + $0x92] sm:$0xff] }
  0x9f   : > { %v462_v58 = vpop.permute.xlu1 %461  ;;  %v1053_v59 = vpop.permute.xlu0 %1052 }
  0xa0   : > { %594 = vst.msk [vmem:[#allocation2 + $0x18] sm:$0xff] %vm590_vm2, %v462_v58  ;;  %v681_v58 = vld [vmem:[%s2188_s24 + $0x142] sm:$0xff] }
  0xa1   : > { %1158 = vst.msk [vmem:[#allocation2 + $0xc0] sm:$0xff] %vm1133_vm4, %v1053_v59  ;;  %1028 = vrot.lane.b32.xlu1 %v930_v56, %s2129_s27  ;;  %v313_v56 = vld [vmem:[%s2188_s24 + $0x138] sm:$0xff] }
  0xa2   : > { %797 = vrot.lane.b32.xlu0 %v677_v57, %s2131_s29  ;;  %359 = vst.msk [vmem:[#allocation2 + $0x138] sm:$0xff] %vm319_vm1, %v313_v56  ;;  %v934_v57 = vld [vmem:[%s2188_s24 + $0x93] sm:$0xff] }
  0xa3   : > { %v736_v62 = vpop.permute.xlu1 %735  ;;  %v506_v63 = vpop.permute.xlu0 %505  ;;  %v1195_v1 = vld [vmem:[#allocation2 + $0x10] sm:$0xff] }
  0xa4   : > { %862 = vst.msk [vmem:[#allocation2 + $0x18] sm:$0xff] %vm858_vm3, %v736_v62  ;;  %1940 = vmatmul.mubr.msk.f32.gmra.mxu0 %vm1247_vm5, %v1195_v1  ;;  %v956_v62 = vld [vmem:[%s2188_s24 + $0x143] sm:$0xff] }
  0xa5   : > { %616 = vst.msk [vmem:[#allocation2 + $0xc8] sm:$0xff] %vm590_vm2, %v506_v63  ;;  %481 = vrot.lane.b32.xlu1 %v378_v60, %s2130_s28  ;;  %1942 = vmatprep.mubr.msk.f32.mxu0 %vm2128_vm0, %v2127_v0 }
  0xa6   : > { %1072 = vrot.lane.b32.xlu0 %v952_v61, %s2129_s27  ;;  %v382_v61 = vld [vmem:[%s2188_s24 + $0x89] sm:$0xff] }
  0xa7   : > { %v1011_v5 = vpop.permute.xlu1 %1010  ;;  %v780_v6 = vpop.permute.xlu0 %779 }
  0xa8   : > { %v1217_v7 = vld [vmem:[#allocation2 + $0xc0] sm:$0xff]  ;;  %1137 = vst.msk [vmem:[#allocation2 + $0x18] sm:$0xff] %vm1133_vm4, %v1011_v5 }
  0xa9   : > { %884 = vst.msk [vmem:[#allocation2 + $0xc8] sm:$0xff] %vm858_vm3, %v780_v6  ;;  %2006 = vmatmul.mubr.msk.f32.gmra.mxu1 %vm1247_vm5, %v1217_v7  ;;  %755 = vrot.lane.b32.xlu1 %v656_v3, %s2131_s29  ;;  %v292_v3 = vld [vmem:[%s2188_s24 + $0x90] sm:$0xff]  ;;  %v404_v5 = vld [vmem:[%s2188_s24 + $0x139] sm:$0xff] }
  0xaa   : > { %525 = vrot.lane.b32.xlu0 %v400_v4, %s2130_s28  ;;  %2008 = vmatprep.mubr.msk.f32.mxu1 %vm2128_vm0, %v2127_v0  ;;  %338 = vst.msk [vmem:[#allocation2 + $0x90] sm:$0xff] %vm319_vm1, %v292_v3  ;;  %v660_v4 = vld [vmem:[%s2188_s24 + $0x9a] sm:$0xff] }
  0xab   : > { %v464_v11 = vpop.permute.xlu1 %463  ;;  %v1055_v12 = vpop.permute.xlu0 %1054 }
  0xac   : > { %595 = vst.msk [vmem:[#allocation2 + $0x20] sm:$0xff] %vm590_vm2, %v464_v11  ;;  %v682_v11 = vld [vmem:[%s2188_s24 + $0x14a] sm:$0xff] }
  0xad   : > { %1159 = vst.msk [vmem:[#allocation2 + $0xc8] sm:$0xff] %vm1133_vm4, %v1055_v12  ;;  %1030 = vrot.lane.b32.xlu1 %v931_v9, %s2129_s27  ;;  %v314_v9 = vld [vmem:[%s2188_s24 + $0x140] sm:$0xff] }
  0xae   : > { %799 = vrot.lane.b32.xlu0 %v678_v10, %s2131_s29  ;;  %360 = vst.msk [vmem:[#allocation2 + $0x140] sm:$0xff] %vm319_vm1, %v314_v9  ;;  %v935_v10 = vld [vmem:[%s2188_s24 + $0x9b] sm:$0xff] }
  0xaf   : > { %v738_v15 = vpop.permute.xlu1 %737  ;;  %v508_v16 = vpop.permute.xlu0 %507  ;;  %v1196_v17 = vld [vmem:[#allocation2 + $0x18] sm:$0xff]  ;;  %v409_v9 = vld [vmem:[%s2188_s24 + $0x161] sm:$0x7f] }
  0xb0   : > { %863 = vst.msk [vmem:[#allocation2 + $0x20] sm:$0xff] %vm858_vm3, %v738_v15  ;;  %1943 = vmatmul.mubr.msk.f32.gmra.mxu0 %vm1247_vm5, %v1196_v17  ;;  %v957_v15 = vld [vmem:[%s2188_s24 + $0x14b] sm:$0xff] }
  0xb1   : > { %617 = vst.msk [vmem:[#allocation2 + $0xd0] sm:$0xff] %vm590_vm2, %v508_v16  ;;  %483 = vrot.lane.b32.xlu1 %v379_v13, %s2130_s28  ;;  %1945 = vmatprep.mubr.msk.f32.mxu0 %vm2128_vm0, %v2127_v0 }
  0xb2   : > { %1074 = vrot.lane.b32.xlu0 %v953_v14, %s2129_s27  ;;  %v383_v14 = vld [vmem:[%s2188_s24 + $0x91] sm:$0xff] }
  0xb3   : > { %v1013_v21 = vpop.permute.xlu1 %1012  ;;  %v782_v22 = vpop.permute.xlu0 %781 }
  0xb4   : > { %v1218_v23 = vld [vmem:[#allocation2 + $0xc8] sm:$0xff]  ;;  %1138 = vst.msk [vmem:[#allocation2 + $0x20] sm:$0xff] %vm1133_vm4, %v1013_v21 }
  0xb5   : > { %885 = vst.msk [vmem:[#allocation2 + $0xd0] sm:$0xff] %vm858_vm3, %v782_v22  ;;  %2009 = vmatmul.mubr.msk.f32.gmra.mxu1 %vm1247_vm5, %v1218_v23  ;;  %757 = vrot.lane.b32.xlu1 %v657_v19, %s2131_s29  ;;  %v293_v19 = vld [vmem:[%s2188_s24 + $0x98] sm:$0xff]  ;;  %v405_v21 = vld [vmem:[%s2188_s24 + $0x141] sm:$0xff] }
  0xb6   : > { %527 = vrot.lane.b32.xlu0 %v401_v20, %s2130_s28  ;;  %2011 = vmatprep.mubr.msk.f32.mxu1 %vm2128_vm0, %v2127_v0  ;;  %339 = vst.msk [vmem:[#allocation2 + $0x98] sm:$0xff] %vm319_vm1, %v293_v19  ;;  %v661_v20 = vld [vmem:[%s2188_s24 + $0xa2] sm:$0xff] }
  0xb7   : > { %v466_v27 = vpop.permute.xlu1 %465  ;;  %v1057_v28 = vpop.permute.xlu0 %1056  ;;  %v939_v19 = vld [vmem:[%s2188_s24 + $0xbb] sm:$0xff] }
  0xb8   : > { %596 = vst.msk [vmem:[#allocation2 + $0x28] sm:$0xff] %vm590_vm2, %v466_v27  ;;  %v683_v27 = vld [vmem:[%s2188_s24 + $0x152] sm:$0xff] }
  0xb9   : > { %1160 = vst.msk [vmem:[#allocation2 + $0xd0] sm:$0xff] %vm1133_vm4, %v1057_v28  ;;  %1032 = vrot.lane.b32.xlu1 %v932_v25, %s2129_s27  ;;  %v315_v25 = vld [vmem:[%s2188_s24 + $0x148] sm:$0xff] }
  0xba   : > { %801 = vrot.lane.b32.xlu0 %v679_v26, %s2131_s29  ;;  %361 = vst.msk [vmem:[#allocation2 + $0x148] sm:$0xff] %vm319_vm1, %v315_v25  ;;  %v936_v26 = vld [vmem:[%s2188_s24 + $0xa3] sm:$0xff] }
  0xbb   : > { %v740_v31 = vpop.permute.xlu1 %739  ;;  %v510_v32 = vpop.permute.xlu0 %509  ;;  %v1197_v33 = vld [vmem:[#allocation2 + $0x20] sm:$0xff] }
  0xbc   : > { %864 = vst.msk [vmem:[#allocation2 + $0x28] sm:$0xff] %vm858_vm3, %v740_v31  ;;  %1946 = vmatmul.mubr.msk.f32.gmra.mxu0 %vm1247_vm5, %v1197_v33  ;;  %v958_v31 = vld [vmem:[%s2188_s24 + $0x153] sm:$0xff] }
  0xbd   : > { %618 = vst.msk [vmem:[#allocation2 + $0xd8] sm:$0xff] %vm590_vm2, %v510_v32  ;;  %485 = vrot.lane.b32.xlu1 %v380_v29, %s2130_s28  ;;  %1948 = vmatprep.mubr.msk.f32.mxu0 %vm2128_vm0, %v2127_v0 }
  0xbe   : > { %1076 = vrot.lane.b32.xlu0 %v954_v30, %s2129_s27  ;;  %v384_v30 = vld [vmem:[%s2188_s24 + $0x99] sm:$0xff] }
  0xbf   : > { %v1015_v37 = vpop.permute.xlu1 %1014  ;;  %v784_v38 = vpop.permute.xlu0 %783 }
  0xc0   : > { %v1219_v39 = vld [vmem:[#allocation2 + $0xd0] sm:$0xff]  ;;  %1139 = vst.msk [vmem:[#allocation2 + $0x28] sm:$0xff] %vm1133_vm4, %v1015_v37 }
  0xc1   : > { %886 = vst.msk [vmem:[#allocation2 + $0xd8] sm:$0xff] %vm858_vm3, %v784_v38  ;;  %2012 = vmatmul.mubr.msk.f32.gmra.mxu1 %vm1247_vm5, %v1219_v39  ;;  %759 = vrot.lane.b32.xlu1 %v658_v35, %s2131_s29  ;;  %v294_v35 = vld [vmem:[%s2188_s24 + $0xa0] sm:$0xff]  ;;  %v406_v37 = vld [vmem:[%s2188_s24 + $0x149] sm:$0xff] }
  0xc2   : > { %529 = vrot.lane.b32.xlu0 %v402_v36, %s2130_s28  ;;  %2014 = vmatprep.mubr.msk.f32.mxu1 %vm2128_vm0, %v2127_v0  ;;  %340 = vst.msk [vmem:[#allocation2 + $0xa0] sm:$0xff] %vm319_vm1, %v294_v35  ;;  %v662_v36 = vld [vmem:[%s2188_s24 + $0xaa] sm:$0xff] }
  0xc3   : > { %v468_v43 = vpop.permute.xlu1 %467  ;;  %v1059_v44 = vpop.permute.xlu0 %1058 }
  0xc4   : > { %597 = vst.msk [vmem:[#allocation2 + $0x30] sm:$0xff] %vm590_vm2, %v468_v43  ;;  %v937_v43 = vld [vmem:[%s2188_s24 + $0xab] sm:$0xff] }
  0xc5   : > { %1161 = vst.msk [vmem:[#allocation2 + $0xd8] sm:$0xff] %vm1133_vm4, %v1059_v44  ;;  %1034 = vrot.lane.b32.xlu1 %v933_v41, %s2129_s27  ;;  %v317_v41 = vld [vmem:[%s2188_s24 + $0x158] sm:$0xff] }
  0xc6   : > { %803 = vrot.lane.b32.xlu0 %v680_v42, %s2131_s29  ;;  %v316_v42 = vld [vmem:[%s2188_s24 + $0x150] sm:$0xff]  ;;  %363 = vst.msk [vmem:[#allocation2 + $0x158] sm:$0xff] %vm319_vm1, %v317_v41  ;;  %v684_v44 = vld [vmem:[%s2188_s24 + $0x15a] sm:$0xff] }
  0xc7   : > { %v742_v47 = vpop.permute.xlu1 %741  ;;  %v512_v48 = vpop.permute.xlu0 %511  ;;  %v1198_v49 = vld [vmem:[#allocation2 + $0x28] sm:$0xff]  ;;  %362 = vst.msk [vmem:[#allocation2 + $0x150] sm:$0xff] %vm319_vm1, %v316_v42 }
  0xc8   : > { %865 = vst.msk [vmem:[#allocation2 + $0x30] sm:$0xff] %vm858_vm3, %v742_v47  ;;  %1949 = vmatmul.mubr.msk.f32.gmra.mxu0 %vm1247_vm5, %v1198_v49  ;;  %v385_v47 = vld [vmem:[%s2188_s24 + $0xa1] sm:$0xff] }
  0xc9   : > { %619 = vst.msk [vmem:[#allocation2 + $0xe0] sm:$0xff] %vm590_vm2, %v512_v48  ;;  %487 = vrot.lane.b32.xlu1 %v381_v45, %s2130_s28  ;;  %1951 = vmatprep.mubr.msk.f32.mxu0 %vm2128_vm0, %v2127_v0  ;;  %v959_v48 = vld [vmem:[%s2188_s24 + $0x15b] sm:$0xff] }
  0xca   : > { %1078 = vrot.lane.b32.xlu0 %v955_v46, %s2129_s27 }
  0xcb   : > { %v1017_v53 = vpop.permute.xlu1 %1016  ;;  %v786_v54 = vpop.permute.xlu0 %785 }
  0xcc   : > { %v1220_v55 = vld [vmem:[#allocation2 + $0xd8] sm:$0xff]  ;;  %1140 = vst.msk [vmem:[#allocation2 + $0x30] sm:$0xff] %vm1133_vm4, %v1017_v53 }
  0xcd   : > { %887 = vst.msk [vmem:[#allocation2 + $0xe0] sm:$0xff] %vm858_vm3, %v786_v54  ;;  %2015 = vmatmul.mubr.msk.f32.gmra.mxu1 %vm1247_vm5, %v1220_v55  ;;  %761 = vrot.lane.b32.xlu1 %v659_v51, %s2131_s29  ;;  %v407_v53 = vld [vmem:[%s2188_s24 + $0x151] sm:$0xff] }
  0xce   : > { %531 = vrot.lane.b32.xlu0 %v403_v52, %s2130_s28  ;;  %2017 = vmatprep.mubr.msk.f32.mxu1 %vm2128_vm0, %v2127_v0  ;;  %v408_v52 = vld [vmem:[%s2188_s24 + $0x159] sm:$0xff] }
  0xcf   : > { %v470_v59 = vpop.permute.xlu1 %469  ;;  %v1061_v60 = vpop.permute.xlu0 %1060 }
  0xd0   : > { %598 = vst.msk [vmem:[#allocation2 + $0x38] sm:$0xff] %vm590_vm2, %v470_v59 }
  0xd1   : > { %1162 = vst.msk [vmem:[#allocation2 + $0xe0] sm:$0xff] %vm1133_vm4, %v1061_v60  ;;  %1036 = vrot.lane.b32.xlu1 %v934_v57, %s2129_s27  ;;  %v685_v57 = vld [vmem:[%s2188_s24 + $0x162] sm:$0x3f] }
  0xd2   : > { %805 = vrot.lane.b32.xlu0 %v681_v58, %s2131_s29  ;;  %v663_v58 = vld [vmem:[%s2188_s24 + $0xb2] sm:$0xff] }
  0xd3   : > { %v744_v63 = vpop.permute.xlu1 %743  ;;  %v514_v1 = vpop.permute.xlu0 %513  ;;  %v1199_v2 = vld [vmem:[#allocation2 + $0x30] sm:$0xff] }
  0xd4   : > { %866 = vst.msk [vmem:[#allocation2 + $0x38] sm:$0xff] %vm858_vm3, %v744_v63  ;;  %1952 = vmatmul.mubr.msk.f32.gmra.mxu0 %vm1247_vm5, %v1199_v2  ;;  %v938_v63 = vld [vmem:[%s2188_s24 + $0xb3] sm:$0xff] }
  0xd5   : > { %620 = vst.msk [vmem:[#allocation2 + $0xe8] sm:$0xff] %vm590_vm2, %v514_v1  ;;  %489 = vrot.lane.b32.xlu1 %v382_v61, %s2130_s28  ;;  %1954 = vmatprep.mubr.msk.f32.mxu0 %vm2128_vm0, %v2127_v0  ;;  %v318_v61 = vld [vmem:[%s2188_s24 + $0x160] sm:$0xff] }
  0xd6   : > { %1080 = vrot.lane.b32.xlu0 %v956_v62, %s2129_s27  ;;  %v295_v62 = vld [vmem:[%s2188_s24 + $0xa8] sm:$0xff]  ;;  %364 = vst.msk [vmem:[#allocation2 + $0x160] sm:$0xff] %vm319_vm1, %v318_v61  ;;  %v271_v1 = vld [vmem:[%s2648_s7] sm:$0xff] }
  0xd7   : > { %v1019_v6 = vpop.permute.xlu1 %1018  ;;  %v788_v7 = vpop.permute.xlu0 %787  ;;  %341 = vst.msk [vmem:[#allocation2 + $0xa8] sm:$0xff] %vm319_vm1, %v295_v62 }
  0xd8   : > { %v1221_v8 = vld [vmem:[#allocation2 + $0xe0] sm:$0xff]  ;;  %1141 = vst.msk [vmem:[#allocation2 + $0x38] sm:$0xff] %vm1133_vm4, %v1019_v6 }
  0xd9   : > { %888 = vst.msk [vmem:[#allocation2 + $0xe8] sm:$0xff] %vm858_vm3, %v788_v7  ;;  %2018 = vmatmul.mubr.msk.f32.gmra.mxu1 %vm1247_vm5, %v1221_v8  ;;  %763 = vrot.lane.b32.xlu1 %v660_v4, %s2131_s29 }
  0xda   : > { %533 = vrot.lane.b32.xlu0 %v404_v5, %s2130_s28  ;;  %2020 = vmatprep.mubr.msk.f32.mxu1 %vm2128_vm0, %v2127_v0  ;;  %v960_v5 = vld [vmem:[%s2188_s24 + $0x163] sm:$0x1f] }
  0xdb   : > { %v472_v12 = vpop.permute.xlu1 %471  ;;  %v1063_v13 = vpop.permute.xlu0 %1062 }
  0xdc   : > { %599 = vst.msk [vmem:[#allocation2 + $0x40] sm:$0xff] %vm590_vm2, %v472_v12 }
  0xdd   : > { %1163 = vst.msk [vmem:[#allocation2 + $0xe8] sm:$0xff] %vm1133_vm4, %v1063_v13  ;;  %1038 = vrot.lane.b32.xlu1 %v935_v10, %s2129_s27  ;;  %v386_v10 = vld [vmem:[%s2188_s24 + $0xa9] sm:$0xff] }
  0xde   : > { %807 = vrot.lane.b32.xlu0 %v682_v11, %s2131_s29  ;;  %v296_v13 = vld [vmem:[%s2188_s24 + $0xb0] sm:$0xff] }
  0xdf   : > { %v746_v16 = vpop.permute.xlu1 %745  ;;  %v516_v17 = vpop.permute.xlu0 %515  ;;  %v1200_v18 = vld [vmem:[#allocation2 + $0x38] sm:$0xff]  ;;  %342 = vst.msk [vmem:[#allocation2 + $0xb0] sm:$0xff] %vm319_vm1, %v296_v13 }
  0xe0   : > { %867 = vst.msk [vmem:[#allocation2 + $0x40] sm:$0xff] %vm858_vm3, %v746_v16  ;;  %1955 = vmatmul.mubr.msk.f32.gmra.mxu0 %vm1247_vm5, %v1200_v18 }
  0xe1   : > { %621 = vst.msk [vmem:[#allocation2 + $0xf0] sm:$0xff] %vm590_vm2, %v516_v17  ;;  %491 = vrot.lane.b32.xlu1 %v383_v14, %s2130_s28  ;;  %1957 = vmatprep.mubr.msk.f32.mxu0 %vm2128_vm0, %v2127_v0  ;;  %v272_v14 = vld [vmem:[%s2648_s7 + $0x8] sm:$0xff] }
  0xe2   : > { %1082 = vrot.lane.b32.xlu0 %v957_v15, %s2129_s27  ;;  %v664_v15 = vld [vmem:[%s2188_s24 + $0xba] sm:$0xff] }
  0xe3   : > { %v1021_v22 = vpop.permute.xlu1 %1020  ;;  %v790_v23 = vpop.permute.xlu0 %789 }
  0xe4   : > { %v1222_v24 = vld [vmem:[#allocation2 + $0xe8] sm:$0xff]  ;;  %1142 = vst.msk [vmem:[#allocation2 + $0x40] sm:$0xff] %vm1133_vm4, %v1021_v22 }
  0xe5   : > { %889 = vst.msk [vmem:[#allocation2 + $0xf0] sm:$0xff] %vm858_vm3, %v790_v23  ;;  %2021 = vmatmul.mubr.msk.f32.gmra.mxu1 %vm1247_vm5, %v1222_v24  ;;  %765 = vrot.lane.b32.xlu1 %v661_v20, %s2131_s29  ;;  %v387_v23 = vld [vmem:[%s2188_s24 + $0xb1] sm:$0xff] }
  0xe6   : > { %535 = vrot.lane.b32.xlu0 %v405_v21, %s2130_s28  ;;  %2023 = vmatprep.mubr.msk.f32.mxu1 %vm2128_vm0, %v2127_v0 }
  0xe7   : > { %v474_v28 = vpop.permute.xlu1 %473  ;;  %v1065_v29 = vpop.permute.xlu0 %1064 }
  0xe8   : > { %600 = vst.msk [vmem:[#allocation2 + $0x48] sm:$0xff] %vm590_vm2, %v474_v28 }
  0xe9   : > { %1164 = vst.msk [vmem:[#allocation2 + $0xf0] sm:$0xff] %vm1133_vm4, %v1065_v29  ;;  %1040 = vrot.lane.b32.xlu1 %v936_v26, %s2129_s27  ;;  %v273_v26 = vld [vmem:[%s2648_s7 + $0x10] sm:$0x3] }
  0xea   : > { %809 = vrot.lane.b32.xlu0 %v683_v27, %s2131_s29  ;;  %v665_v27 = vld [vmem:[%s2188_s24 + $0xc2] sm:$0xff] }
  0xeb   : > { %v748_v32 = vpop.permute.xlu1 %747  ;;  %v518_v33 = vpop.permute.xlu0 %517  ;;  %v1201_v34 = vld [vmem:[#allocation2 + $0x40] sm:$0xff] }
  0xec   : > { %868 = vst.msk [vmem:[#allocation2 + $0x48] sm:$0xff] %vm858_vm3, %v748_v32  ;;  %1958 = vmatmul.mubr.msk.f32.gmra.mxu0 %vm1247_vm5, %v1201_v34 }
  0xed   : > { %622 = vst.msk [vmem:[#allocation2 + $0xf8] sm:$0xff] %vm590_vm2, %v518_v33  ;;  %493 = vrot.lane.b32.xlu1 %v384_v30, %s2130_s28  ;;  %1960 = vmatprep.mubr.msk.f32.mxu0 %vm2128_vm0, %v2127_v0 }
  0xee   : > { %1084 = vrot.lane.b32.xlu0 %v958_v31, %s2129_s27  ;;  %v940_v31 = vld [vmem:[%s2188_s24 + $0xc3] sm:$0xff] }
  0xef   : > { %v1023_v38 = vpop.permute.xlu1 %1022  ;;  %v792_v39 = vpop.permute.xlu0 %791 }
  0xf0   : > { %v1223_v40 = vld [vmem:[#allocation2 + $0xf0] sm:$0xff]  ;;  %1143 = vst.msk [vmem:[#allocation2 + $0x48] sm:$0xff] %vm1133_vm4, %v1023_v38 }
  0xf1   : > { %890 = vst.msk [vmem:[#allocation2 + $0xf8] sm:$0xff] %vm858_vm3, %v792_v39  ;;  %2024 = vmatmul.mubr.msk.f32.gmra.mxu1 %vm1247_vm5, %v1223_v40  ;;  %767 = vrot.lane.b32.xlu1 %v662_v36, %s2131_s29 }
  0xf2   : > { %537 = vrot.lane.b32.xlu0 %v406_v37, %s2130_s28  ;;  %2026 = vmatprep.mubr.msk.f32.mxu1 %vm2128_vm0, %v2127_v0 }
  0xf3   : > { %v476_v45 = vpop.permute.xlu1 %475  ;;  %v1067_v46 = vpop.permute.xlu0 %1066 }
  0xf4   : > { %601 = vst.msk [vmem:[#allocation2 + $0x50] sm:$0xff] %vm590_vm2, %v476_v45 }
  0xf5   : > { %1165 = vst.msk [vmem:[#allocation2 + $0xf8] sm:$0xff] %vm1133_vm4, %v1067_v46  ;;  %1042 = vrot.lane.b32.xlu1 %v937_v43, %s2129_s27 }
  0xf6   : > { %811 = vrot.lane.b32.xlu0 %v684_v44, %s2131_s29 }
  0xf7   : > { %v750_v49 = vpop.permute.xlu1 %749  ;;  %v520_v50 = vpop.permute.xlu0 %519  ;;  %v1202_v51 = vld [vmem:[#allocation2 + $0x48] sm:$0xff] }
  0xf8   : > { %869 = vst.msk [vmem:[#allocation2 + $0x50] sm:$0xff] %vm858_vm3, %v750_v49  ;;  %1961 = vmatmul.mubr.msk.f32.gmra.mxu0 %vm1247_vm5, %v1202_v51 }
  0xf9   : > { %623 = vst.msk [vmem:[#allocation2 + $0x100] sm:$0xff] %vm590_vm2, %v520_v50  ;;  %495 = vrot.lane.b32.xlu1 %v385_v47, %s2130_s28  ;;  %1963 = vmatprep.mubr.msk.f32.mxu0 %vm2128_vm0, %v2127_v0 }
  0xfa   : > { %1086 = vrot.lane.b32.xlu0 %v959_v48, %s2129_s27 }
  0xfb   : > { %v1025_v54 = vpop.permute.xlu1 %1024  ;;  %v794_v55 = vpop.permute.xlu0 %793 }
  0xfc   : > { %v1224_v56 = vld [vmem:[#allocation2 + $0xf8] sm:$0xff]  ;;  %1144 = vst.msk [vmem:[#allocation2 + $0x50] sm:$0xff] %vm1133_vm4, %v1025_v54 }
  0xfd   : > { %891 = vst.msk [vmem:[#allocation2 + $0x100] sm:$0xff] %vm858_vm3, %v794_v55  ;;  %2027 = vmatmul.mubr.msk.f32.gmra.mxu1 %vm1247_vm5, %v1224_v56  ;;  %541 = vrot.lane.b32.xlu1 %v408_v52, %s2130_s28 }
  0xfe   : > { %539 = vrot.lane.b32.xlu0 %v407_v53, %s2130_s28  ;;  %2029 = vmatprep.mubr.msk.f32.mxu1 %vm2128_vm0, %v2127_v0 }
  0xff   : > { %v478_v59 = vpop.permute.xlu1 %477  ;;  %v1069_v60 = vpop.permute.xlu0 %1068 }
 0x100   : > { %602 = vst.msk [vmem:[#allocation2 + $0x58] sm:$0xff] %vm590_vm2, %v478_v59 }
 0x101   : > { %1166 = vst.msk [vmem:[#allocation2 + $0x100] sm:$0xff] %vm1133_vm4, %v1069_v60  ;;  %813 = vrot.lane.b32.xlu1 %v685_v57, %s2131_s29 }
 0x102   : > { %769 = vrot.lane.b32.xlu0 %v663_v58, %s2131_s29 }
 0x103   : > { %v752_v2 = vpop.permute.xlu1 %751  ;;  %v522_v3 = vpop.permute.xlu0 %521  ;;  %v1203_v4 = vld [vmem:[#allocation2 + $0x50] sm:$0xff] }
 0x104   : > { %870 = vst.msk [vmem:[#allocation2 + $0x58] sm:$0xff] %vm858_vm3, %v752_v2  ;;  %1964 = vmatmul.mubr.msk.f32.gmra.mxu0 %vm1247_vm5, %v1203_v4  ;;  %v2771_v4 = vld [vmem:[%s2989_s3] ss:$0 sm:$0xff] }
 0x105   : > { %624 = vst.msk [vmem:[#allocation2 + $0x108] sm:$0xff] %vm590_vm2, %v522_v3  ;;  %1044 = vrot.lane.b32.xlu1 %v938_v63, %s2129_s27  ;;  %1966 = vmatprep.mubr.msk.f32.mxu0 %vm2128_vm0, %v2127_v0 }
 0x106   : > { %905 = vrot.lane.b32.xlu0 %v271_v1, %s2131_s29 }
 0x107   : > { %v1027_v6 = vpop.permute.xlu1 %1026  ;;  %v796_v7 = vpop.permute.xlu0 %795 }
 0x108   : > { %v1225_v8 = vld [vmem:[#allocation2 + $0x100] sm:$0xff]  ;;  %1145 = vst.msk [vmem:[#allocation2 + $0x58] sm:$0xff] %vm1133_vm4, %v1027_v6 }
 0x109   : > { %892 = vst.msk [vmem:[#allocation2 + $0x108] sm:$0xff] %vm858_vm3, %v796_v7  ;;  %2030 = vmatmul.mubr.msk.f32.gmra.mxu1 %vm1247_vm5, %v1225_v8  ;;  %1178 = vrot.lane.b32.xlu1 %v271_v1, %s2129_s27 }
 0x10a   : > { %1088 = vrot.lane.b32.xlu0 %v960_v5, %s2129_s27  ;;  %2032 = vmatprep.mubr.msk.f32.mxu1 %vm2128_vm0, %v2127_v0 }
 0x10b   : > { %v480_v11 = vpop.permute.xlu1 %479  ;;  %v1071_v12 = vpop.permute.xlu0 %1070 }
 0x10c   : > { %603 = vst.msk [vmem:[#allocation2 + $0x60] sm:$0xff] %vm590_vm2, %v480_v11 }
 0x10d   : > { %1167 = vst.msk [vmem:[#allocation2 + $0x108] sm:$0xff] %vm1133_vm4, %v1071_v12  ;;  %543 = vrot.lane.b32.xlu1 %v409_v9, %s2130_s28 }
 0x10e   : > { %497 = vrot.lane.b32.xlu0 %v386_v10, %s2130_s28 }
 0x10f   : > { %v754_v16 = vpop.permute.xlu1 %753  ;;  %v1204_v18 = vld [vmem:[#allocation2 + $0x58] sm:$0xff] }
 0x110   : > { %v524_v17 = vpop.permute.xlu0 %523  ;;  %871 = vst.msk [vmem:[#allocation2 + $0x60] sm:$0xff] %vm858_vm3, %v754_v16  ;;  %1967 = vmatmul.mubr.msk.f32.gmra.mxu0 %vm1247_vm5, %v1204_v18 }
 0x111   : > { %625 = vst.msk [vmem:[#allocation2 + $0x110] sm:$0xff] %vm590_vm2, %v524_v17  ;;  %907 = vrot.lane.b32.xlu1 %v272_v14, %s2131_s29  ;;  %1969 = vmatprep.mubr.msk.f32.mxu0 %vm2128_vm0, %v2127_v0 }
 0x112   : > { %771 = vrot.lane.b32.xlu0 %v664_v15, %s2131_s29 }
 0x113   : > { %v1029_v20 = vpop.permute.xlu1 %1028 }
 0x114   : > { %v798_v21 = vpop.permute.xlu0 %797  ;;  %v1226_v22 = vld [vmem:[#allocation2 + $0x108] sm:$0xff]  ;;  %1146 = vst.msk [vmem:[#allocation2 + $0x60] sm:$0xff] %vm1133_vm4, %v1029_v20 }
 0x115   : > { %893 = vst.msk [vmem:[#allocation2 + $0x110] sm:$0xff] %vm858_vm3, %v798_v21  ;;  %2033 = vmatmul.mubr.msk.f32.gmra.mxu1 %vm1247_vm5, %v1226_v22  ;;  %1180 = vrot.lane.b32.xlu1 %v272_v14, %s2129_s27 }
 0x116   : > { %1046 = vrot.lane.b32.xlu0 %v939_v19, %s2129_s27  ;;  %2035 = vmatprep.mubr.msk.f32.mxu1 %vm2128_vm0, %v2127_v0 }
 0x117   : > { %v482_v24 = vpop.permute.xlu1 %481 }
 0x118   : > { %v1073_v25 = vpop.permute.xlu0 %1072  ;;  %604 = vst.msk [vmem:[#allocation2 + $0x68] sm:$0xff] %vm590_vm2, %v482_v24 }
 0x119   : > { %1168 = vst.msk [vmem:[#allocation2 + $0x110] sm:$0xff] %vm1133_vm4, %v1073_v25  ;;  %638 = vrot.lane.b32.xlu1 %v271_v1, %s2130_s28 }
 0x11a   : > { %499 = vrot.lane.b32.xlu0 %v387_v23, %s2130_s28 }
 0x11b   : > { %v756_v28 = vpop.permute.xlu1 %755  ;;  %v1205_v30 = vld [vmem:[#allocation2 + $0x60] sm:$0xff] }
 0x11c   : > { %v526_v29 = vpop.permute.xlu0 %525  ;;  %872 = vst.msk [vmem:[#allocation2 + $0x68] sm:$0xff] %vm858_vm3, %v756_v28  ;;  %1970 = vmatmul.mubr.msk.f32.gmra.mxu0 %vm1247_vm5, %v1205_v30 }
 0x11d   : > { %626 = vst.msk [vmem:[#allocation2 + $0x118] sm:$0xff] %vm590_vm2, %v526_v29  ;;  %909 = vrot.lane.b32.xlu1 %v273_v26, %s2131_s29  ;;  %1972 = vmatprep.mubr.msk.f32.mxu0 %vm2128_vm0, %v2127_v0 }
 0x11e   : > { %773 = vrot.lane.b32.xlu0 %v665_v27, %s2131_s29 }
 0x11f   : > { %v1031_v32 = vpop.permute.xlu1 %1030 }
 0x120   : > { %v800_v33 = vpop.permute.xlu0 %799  ;;  %v1227_v34 = vld [vmem:[#allocation2 + $0x110] sm:$0xff]  ;;  %1147 = vst.msk [vmem:[#allocation2 + $0x68] sm:$0xff] %vm1133_vm4, %v1031_v32 }
 0x121   : > { %894 = vst.msk [vmem:[#allocation2 + $0x118] sm:$0xff] %vm858_vm3, %v800_v33  ;;  %2036 = vmatmul.mubr.msk.f32.gmra.mxu1 %vm1247_vm5, %v1227_v34  ;;  %1182 = vrot.lane.b32.xlu1 %v273_v26, %s2129_s27 }
 0x122   : > { %1048 = vrot.lane.b32.xlu0 %v940_v31, %s2129_s27  ;;  %2038 = vmatprep.mubr.msk.f32.mxu1 %vm2128_vm0, %v2127_v0 }
 0x123   : > { %v484_v35 = vpop.permute.xlu1 %483 }
 0x124   : > { %v1075_v36 = vpop.permute.xlu0 %1074  ;;  %605 = vst.msk [vmem:[#allocation2 + $0x70] sm:$0xff] %vm590_vm2, %v484_v35 }
 0x125   : > { %1169 = vst.msk [vmem:[#allocation2 + $0x118] sm:$0xff] %vm1133_vm4, %v1075_v36 }
 0x127   : > { %v758_v37 = vpop.permute.xlu1 %757  ;;  %v1206_v39 = vld [vmem:[#allocation2 + $0x68] sm:$0xff] }
 0x128   : > { %v528_v38 = vpop.permute.xlu0 %527  ;;  %873 = vst.msk [vmem:[#allocation2 + $0x70] sm:$0xff] %vm858_vm3, %v758_v37  ;;  %1973 = vmatmul.mubr.msk.f32.gmra.mxu0 %vm1247_vm5, %v1206_v39 }
 0x129   : > { %627 = vst.msk [vmem:[#allocation2 + $0x120] sm:$0xff] %vm590_vm2, %v528_v38  ;;  %1975 = vmatprep.mubr.msk.f32.mxu0 %vm2128_vm0, %v2127_v0 }
 0x12b   : > { %v1033_v40 = vpop.permute.xlu1 %1032 }
 0x12c   : > { %v802_v41 = vpop.permute.xlu0 %801  ;;  %v1228_v42 = vld [vmem:[#allocation2 + $0x118] sm:$0xff]  ;;  %1148 = vst.msk [vmem:[#allocation2 + $0x70] sm:$0xff] %vm1133_vm4, %v1033_v40 }
 0x12d   : > { %895 = vst.msk [vmem:[#allocation2 + $0x120] sm:$0xff] %vm858_vm3, %v802_v41  ;;  %2039 = vmatmul.mubr.msk.f32.gmra.mxu1 %vm1247_vm5, %v1228_v42 }
 0x12e   : > { %2041 = vmatprep.mubr.msk.f32.mxu1 %vm2128_vm0, %v2127_v0 }
 0x12f   : > { %v486_v43 = vpop.permute.xlu1 %485 }
 0x130   : > { %v1077_v44 = vpop.permute.xlu0 %1076  ;;  %606 = vst.msk [vmem:[#allocation2 + $0x78] sm:$0xff] %vm590_vm2, %v486_v43 }
 0x131   : > { %1170 = vst.msk [vmem:[#allocation2 + $0x120] sm:$0xff] %vm1133_vm4, %v1077_v44 }
 0x133   : > { %v760_v45 = vpop.permute.xlu1 %759  ;;  %v1207_v47 = vld [vmem:[#allocation2 + $0x70] sm:$0xff] }
 0x134   : > { %v530_v46 = vpop.permute.xlu0 %529  ;;  %874 = vst.msk [vmem:[#allocation2 + $0x78] sm:$0xff] %vm858_vm3, %v760_v45  ;;  %1976 = vmatmul.mubr.msk.f32.gmra.mxu0 %vm1247_vm5, %v1207_v47 }
 0x135   : > { %628 = vst.msk [vmem:[#allocation2 + $0x128] sm:$0xff] %vm590_vm2, %v530_v46  ;;  %1978 = vmatprep.mubr.msk.f32.mxu0 %vm2128_vm0, %v2127_v0 }
 0x137   : > { %v1035_v48 = vpop.permute.xlu1 %1034 }
 0x138   : > { %v804_v49 = vpop.permute.xlu0 %803  ;;  %v1229_v50 = vld [vmem:[#allocation2 + $0x120] sm:$0xff]  ;;  %1149 = vst.msk [vmem:[#allocation2 + $0x78] sm:$0xff] %vm1133_vm4, %v1035_v48 }
 0x139   : > { %896 = vst.msk [vmem:[#allocation2 + $0x128] sm:$0xff] %vm858_vm3, %v804_v49  ;;  %2042 = vmatmul.mubr.msk.f32.gmra.mxu1 %vm1247_vm5, %v1229_v50 }
 0x13a   : > { %2044 = vmatprep.mubr.msk.f32.mxu1 %vm2128_vm0, %v2127_v0 }
 0x13b   : > { %v488_v51 = vpop.permute.xlu1 %487 }
 0x13c   : > { %v1079_v52 = vpop.permute.xlu0 %1078  ;;  %607 = vst.msk [vmem:[#allocation2 + $0x80] sm:$0xff] %vm590_vm2, %v488_v51 }
 0x13d   : > { %1171 = vst.msk [vmem:[#allocation2 + $0x128] sm:$0xff] %vm1133_vm4, %v1079_v52 }
 0x13f   : > { %v762_v53 = vpop.permute.xlu1 %761  ;;  %v1208_v55 = vld [vmem:[#allocation2 + $0x78] sm:$0xff] }
 0x140   : > { %v532_v54 = vpop.permute.xlu0 %531  ;;  %875 = vst.msk [vmem:[#allocation2 + $0x80] sm:$0xff] %vm858_vm3, %v762_v53  ;;  %1979 = vmatmul.mubr.msk.f32.gmra.mxu0 %vm1247_vm5, %v1208_v55 }
 0x141   : > { %629 = vst.msk [vmem:[#allocation2 + $0x130] sm:$0xff] %vm590_vm2, %v532_v54  ;;  %1981 = vmatprep.mubr.msk.f32.mxu0 %vm2128_vm0, %v2127_v0 }
 0x143   : > { %v1037_v56 = vpop.permute.xlu1 %1036 }
 0x144   : > { %v806_v57 = vpop.permute.xlu0 %805  ;;  %v1230_v58 = vld [vmem:[#allocation2 + $0x128] sm:$0xff]  ;;  %1150 = vst.msk [vmem:[#allocation2 + $0x80] sm:$0xff] %vm1133_vm4, %v1037_v56 }
 0x145   : > { %897 = vst.msk [vmem:[#allocation2 + $0x130] sm:$0xff] %vm858_vm3, %v806_v57  ;;  %2045 = vmatmul.mubr.msk.f32.gmra.mxu1 %vm1247_vm5, %v1230_v58 }
 0x146   : > { %2047 = vmatprep.mubr.msk.f32.mxu1 %vm2128_vm0, %v2127_v0 }
 0x147   : > { %v490_v59 = vpop.permute.xlu1 %489 }
 0x148   : > { %v1081_v60 = vpop.permute.xlu0 %1080  ;;  %608 = vst.msk [vmem:[#allocation2 + $0x88] sm:$0xff] %vm590_vm2, %v490_v59 }
 0x149   : > { %1172 = vst.msk [vmem:[#allocation2 + $0x130] sm:$0xff] %vm1133_vm4, %v1081_v60 }
 0x14b   : > { %v764_v61 = vpop.permute.xlu1 %763  ;;  %v1209_v63 = vld [vmem:[#allocation2 + $0x80] sm:$0xff] }
 0x14c   : > { %v534_v62 = vpop.permute.xlu0 %533  ;;  %876 = vst.msk [vmem:[#allocation2 + $0x88] sm:$0xff] %vm858_vm3, %v764_v61  ;;  %1982 = vmatmul.mubr.msk.f32.gmra.mxu0 %vm1247_vm5, %v1209_v63 }
 0x14d   : > { %630 = vst.msk [vmem:[#allocation2 + $0x138] sm:$0xff] %vm590_vm2, %v534_v62  ;;  %1984 = vmatprep.mubr.msk.f32.mxu0 %vm2128_vm0, %v2127_v0 }
 0x14f   : > { %v1039_v1 = vpop.permute.xlu1 %1038 }
 0x150   : > { %v808_v2 = vpop.permute.xlu0 %807  ;;  %v1231_v3 = vld [vmem:[#allocation2 + $0x130] sm:$0xff]  ;;  %1151 = vst.msk [vmem:[#allocation2 + $0x88] sm:$0xff] %vm1133_vm4, %v1039_v1 }
 0x151   : > { %898 = vst.msk [vmem:[#allocation2 + $0x138] sm:$0xff] %vm858_vm3, %v808_v2  ;;  %2048 = vmatmul.mubr.msk.f32.gmra.mxu1 %vm1247_vm5, %v1231_v3 }
 0x152   : > { %2050 = vmatprep.mubr.msk.f32.mxu1 %vm2128_vm0, %v2127_v0  ;;  %v1449_v5 = vpop.f32.mrf.mxu0 }
 0x153   : > { %v1450_v6 = vadd.f32 %v2771_v4, %v1449_v5  ;;  %v492_v7 = vpop.permute.xlu1 %491 }
 0x154   : > { %v1083_v8 = vpop.permute.xlu0 %1082  ;;  %609 = vst.msk [vmem:[#allocation2 + $0x90] sm:$0xff] %vm590_vm2, %v492_v7  ;;  %v1935_v9 = vpop.f32.mrf.mxu0 }
 0x155   : > { %1173 = vst.msk [vmem:[#allocation2 + $0x138] sm:$0xff] %vm1133_vm4, %v1083_v8 }
 0x156   : > { %1673 = vst.msk [vmem:[%s2780_s12] sm:$0xff] %vm1247_vm5, %v1450_v6 }
 0x157   : > { %v766_v10 = vpop.permute.xlu1 %765  ;;  %v1210_v12 = vld [vmem:[#allocation2 + $0x88] sm:$0xff] }
 0x158   : > { %v536_v11 = vpop.permute.xlu0 %535  ;;  %877 = vst.msk [vmem:[#allocation2 + $0x90] sm:$0xff] %vm858_vm3, %v766_v10  ;;  %v1454_v13 = vpop.f32.mrf.mxu0  ;;  %1985 = vmatmul.mubr.msk.f32.gmra.mxu0 %vm1247_vm5, %v1210_v12 }
 0x159   : > { %631 = vst.msk [vmem:[#allocation2 + $0x140] sm:$0xff] %vm590_vm2, %v536_v11  ;;  %v1455_v14 = vadd.f32 %v2771_v4, %v1454_v13  ;;  %1987 = vmatprep.mubr.msk.f32.mxu0 %vm2128_vm0, %v2127_v0 }
 0x15a   : > { %v1938_v15 = vpop.f32.mrf.mxu0 }
 0x15b   : > { %1674 = vst.msk [vmem:[%s2780_s12 + $0x8] sm:$0xff] %vm1247_vm5, %v1455_v14  ;;  %v1041_v16 = vpop.permute.xlu1 %1040 }
 0x15c   : > { %v810_v17 = vpop.permute.xlu0 %809  ;;  %v1232_v18 = vld [vmem:[#allocation2 + $0x138] sm:$0xff]  ;;  %1152 = vst.msk [vmem:[#allocation2 + $0x90] sm:$0xff] %vm1133_vm4, %v1041_v16 }
 0x15d   : > { %899 = vst.msk [vmem:[#allocation2 + $0x140] sm:$0xff] %vm858_vm3, %v810_v17  ;;  %v1564_v19 = vpop.f32.mrf.mxu1  ;;  %2051 = vmatmul.mubr.msk.f32.gmra.mxu1 %vm1247_vm5, %v1232_v18 }
 0x15e   : > { %v1565_v20 = vadd.f32 %v2771_v4, %v1564_v19  ;;  %2053 = vmatprep.mubr.msk.f32.mxu1 %vm2128_vm0, %v2127_v0 }
 0x15f   : > { %v2004_v21 = vpop.f32.mrf.mxu1  ;;  %v494_v22 = vpop.permute.xlu1 %493 }
 0x160   : > { %1696 = vst.msk [vmem:[%s2780_s12 + $0xb8] sm:$0xff] %vm1247_vm5, %v1565_v20  ;;  %v1085_v23 = vpop.permute.xlu0 %1084 }
 0x161   : > { %610 = vst.msk [vmem:[#allocation2 + $0x98] sm:$0xff] %vm590_vm2, %v494_v22 }
 0x162   : > { %1174 = vst.msk [vmem:[#allocation2 + $0x140] sm:$0xff] %vm1133_vm4, %v1085_v23 }
 0x163   : > { %v768_v24 = vpop.permute.xlu1 %767  ;;  %v1211_v26 = vld [vmem:[#allocation2 + $0x90] sm:$0xff] }
 0x164   : > { %v538_v25 = vpop.permute.xlu0 %537  ;;  %878 = vst.msk [vmem:[#allocation2 + $0x98] sm:$0xff] %vm858_vm3, %v768_v24  ;;  %v1459_v27 = vpop.f32.mrf.mxu0  ;;  %1988 = vmatmul.mubr.msk.f32.gmra.mxu0 %vm1247_vm5, %v1211_v26 }
 0x165   : > { %632 = vst.msk [vmem:[#allocation2 + $0x148] sm:$0xff] %vm590_vm2, %v538_v25  ;;  %v1460_v28 = vadd.f32 %v2771_v4, %v1459_v27  ;;  %1990 = vmatprep.mubr.msk.f32.mxu0 %vm2128_vm0, %v2127_v0 }
 0x166   : > { %v1941_v29 = vpop.f32.mrf.mxu0 }
 0x167   : > { %1675 = vst.msk [vmem:[%s2780_s12 + $0x10] sm:$0xff] %vm1247_vm5, %v1460_v28  ;;  %v1043_v30 = vpop.permute.xlu1 %1042 }
 0x168   : > { %v812_v31 = vpop.permute.xlu0 %811  ;;  %1153 = vst.msk [vmem:[#allocation2 + $0x98] sm:$0xff] %vm1133_vm4, %v1043_v30 }
 0x169   : > { %v1233_v32 = vld [vmem:[#allocation2 + $0x140] sm:$0xff]  ;;  %900 = vst.msk [vmem:[#allocation2 + $0x148] sm:$0xff] %vm858_vm3, %v812_v31  ;;  %v1569_v33 = vpop.f32.mrf.mxu1 }
 0x16a   : > { %2054 = vmatmul.mubr.msk.f32.gmra.mxu1 %vm1247_vm5, %v1233_v32  ;;  %v1570_v34 = vadd.f32 %v2771_v4, %v1569_v33 }
 0x16b   : > { %2056 = vmatprep.mubr.msk.f32.mxu1 %vm2128_vm0, %v2127_v0  ;;  %v2007_v35 = vpop.f32.mrf.mxu1  ;;  %v496_v36 = vpop.permute.xlu1 %495 }
 0x16c   : > { %1697 = vst.msk [vmem:[%s2780_s12 + $0xc0] sm:$0xff] %vm1247_vm5, %v1570_v34  ;;  %v1087_v37 = vpop.permute.xlu0 %1086 }
 0x16d   : > { %611 = vst.msk [vmem:[#allocation2 + $0xa0] sm:$0xff] %vm590_vm2, %v496_v36 }
 0x16e   : > { %1175 = vst.msk [vmem:[#allocation2 + $0x148] sm:$0xff] %vm1133_vm4, %v1087_v37 }
 0x16f   : > { %v542_v38 = vpop.permute.xlu1 %541  ;;  %v1212_v40 = vld [vmem:[#allocation2 + $0x98] sm:$0xff] }
 0x170   : > { %v540_v39 = vpop.permute.xlu0 %539  ;;  %634 = vst.msk [vmem:[#allocation2 + $0x158] sm:$0xff] %vm590_vm2, %v542_v38  ;;  %v1464_v41 = vpop.f32.mrf.mxu0  ;;  %1991 = vmatmul.mubr.msk.f32.gmra.mxu0 %vm1247_vm5, %v1212_v40 }
 0x171   : > { %633 = vst.msk [vmem:[#allocation2 + $0x150] sm:$0xff] %vm590_vm2, %v540_v39  ;;  %v1465_v42 = vadd.f32 %v2771_v4, %v1464_v41  ;;  %1993 = vmatprep.mubr.msk.f32.mxu0 %vm2128_vm0, %v2127_v0 }
 0x172   : > { %v1944_v43 = vpop.f32.mrf.mxu0 }
 0x173   : > { %1676 = vst.msk [vmem:[%s2780_s12 + $0x18] sm:$0xff] %vm1247_vm5, %v1465_v42  ;;  %v814_v44 = vpop.permute.xlu1 %813 }
 0x174   : > { %v770_v45 = vpop.permute.xlu0 %769  ;;  %902 = vst.msk [vmem:[#allocation2 + $0x150] sm:$0x3f] %vm901_vm6, %v814_v44 }
 0x175   : > { %v1234_v46 = vld [vmem:[#allocation2 + $0x148] sm:$0xff]  ;;  %879 = vst.msk [vmem:[#allocation2 + $0xa0] sm:$0xff] %vm858_vm3, %v770_v45  ;;  %v1574_v47 = vpop.f32.mrf.mxu1 }
 0x176   : > { %2057 = vmatmul.mubr.msk.f32.gmra.mxu1 %vm1247_vm5, %v1234_v46  ;;  %v1575_v48 = vadd.f32 %v2771_v4, %v1574_v47 }
 0x177   : > { %2059 = vmatprep.mubr.msk.f32.mxu1 %vm2128_vm0, %v2127_v0  ;;  %v2010_v49 = vpop.f32.mrf.mxu1  ;;  %v1045_v50 = vpop.permute.xlu1 %1044 }
 0x178   : > { %1698 = vst.msk [vmem:[%s2780_s12 + $0xc8] sm:$0xff] %vm1247_vm5, %v1575_v48  ;;  %v906_v51 = vpop.permute.xlu0 %905 }
 0x179   : > { %1154 = vst.msk [vmem:[#allocation2 + $0xa0] sm:$0xff] %vm1133_vm4, %v1045_v50 }
 0x17a   : > { %914 = vst.msk [vmem:[#allocation2 + $0x156] sm:$0xff] %vm858_vm3, %v906_v51 }
 0x17b   : > { %v1179_v52 = vpop.permute.xlu1 %1178 }
 0x17c   : > { %v1089_v53 = vpop.permute.xlu0 %1088  ;;  %1187 = vst.msk [vmem:[#allocation2 + $0x155] sm:$0xff] %vm1133_vm4, %v1179_v52  ;;  %v1469_v54 = vpop.f32.mrf.mxu0 }
 0x17d   : > { %1177 = vst.msk [vmem:[#allocation2 + $0x150] sm:$0x1f] %vm1176_vm7, %v1089_v53  ;;  %v1470_v55 = vadd.f32 %v2771_v4, %v1469_v54 }
 0x17e   : > { %v1947_v56 = vpop.f32.mrf.mxu0 }
 0x17f   : > { %1677 = vst.msk [vmem:[%s2780_s12 + $0x20] sm:$0xff] %vm1247_vm5, %v1470_v55  ;;  %v544_v57 = vpop.permute.xlu1 %543 }
 0x180   : > { %v498_v58 = vpop.permute.xlu0 %497  ;;  %v1213_v59 = vld [vmem:[#allocation2 + $0xa0] sm:$0xff]  ;;  %636 = vst.msk [vmem:[#allocation2 + $0x160] sm:$0x7f] %vm635_vm8, %v544_v57 }
 0x181   : > { %612 = vst.msk [vmem:[#allocation2 + $0xa8] sm:$0xff] %vm590_vm2, %v498_v58  ;;  %1994 = vmatmul.mubr.msk.f32.gmra.mxu0 %vm1247_vm5, %v1213_v59  ;;  %v1579_v60 = vpop.f32.mrf.mxu1 }
 0x182   : > { %v1580_v61 = vadd.f32 %v2771_v4, %v1579_v60  ;;  %1996 = vmatprep.mubr.msk.f32.mxu0 %vm2128_vm0, %v2127_v0 }
 0x183   : > { %v2013_v62 = vpop.f32.mrf.mxu1  ;;  %v908_v63 = vpop.permute.xlu1 %907 }
 0x184   : > { %1699 = vst.msk [vmem:[%s2780_s12 + $0xd0] sm:$0xff] %vm1247_vm5, %v1580_v61  ;;  %v772_v1 = vpop.permute.xlu0 %771  ;;  %v1235_v2 = vld [vmem:[#allocation2 + $0x150] sm:$0xff] }
 0x185   : > { %915 = vst.msk [vmem:[#allocation2 + $0x15e] sm:$0xff] %vm858_vm3, %v908_v63  ;;  %880 = vst.msk [vmem:[#allocation2 + $0xa8] sm:$0xff] %vm858_vm3, %v772_v1  ;;  %2060 = vmatmul.mubr.msk.f32.gmra.mxu1 %vm1247_vm5, %v1235_v2 }
 0x186   : > { %2062 = vmatprep.mubr.msk.f32.mxu1 %vm2128_vm0, %v2127_v0 }
 0x187   : > { %v1181_v3 = vpop.permute.xlu1 %1180 }
 0x188   : > { %v1047_v5 = vpop.permute.xlu0 %1046  ;;  %1188 = vst.msk [vmem:[#allocation2 + $0x15d] sm:$0xff] %vm1133_vm4, %v1181_v3  ;;  %v1474_v6 = vpop.f32.mrf.mxu0 }
 0x189   : > { %1155 = vst.msk [vmem:[#allocation2 + $0xa8] sm:$0xff] %vm1133_vm4, %v1047_v5  ;;  %v1475_v7 = vadd.f32 %v2771_v4, %v1474_v6 }
 0x18a   : > { %v1950_v8 = vpop.f32.mrf.mxu0 }
 0x18b   : > { %1678 = vst.msk [vmem:[%s2780_s12 + $0x28] sm:$0xff] %vm1247_vm5, %v1475_v7  ;;  %v639_v9 = vpop.permute.xlu1 %638 }
 0x18c   : > { %v500_v10 = vpop.permute.xlu0 %499  ;;  %642 = vst.msk [vmem:[#allocation2 + $0x167] sm:$0x1] %vm641_vm9, %v639_v9 }
 0x18d   : > { %613 = vst.msk [vmem:[#allocation2 + $0xb0] sm:$0xff] %vm590_vm2, %v500_v10  ;;  %v1584_v11 = vpop.f32.mrf.mxu1 }
 0x18e   : > { %v1585_v12 = vadd.f32 %v2771_v4, %v1584_v11 }
 0x18f   : > { %v2016_v13 = vpop.f32.mrf.mxu1  ;;  %v910_v14 = vpop.permute.xlu1 %909  ;;  %v1236_v17 = vld [vmem:[#allocation2 + $0x158] sm:$0xff] }
 0x190   : > { %1700 = vst.msk [vmem:[%s2780_s12 + $0xd8] sm:$0xff] %vm1247_vm5, %v1585_v12  ;;  %v774_v15 = vpop.permute.xlu0 %773  ;;  %v1214_v16 = vld [vmem:[#allocation2 + $0xa8] sm:$0xff]  ;;  %2063 = vmatmul.mubr.msk.f32.gmra.mxu1 %vm1247_vm5, %v1236_v17 }
 0x191   : > { %917 = vst.msk [vmem:[#allocation2 + $0x166] sm:$0x3] %vm916_vm10, %v910_v14  ;;  %1997 = vmatmul.mubr.msk.f32.gmra.mxu0 %vm1247_vm5, %v1214_v16  ;;  %2065 = vmatprep.mubr.msk.f32.mxu1 %vm2128_vm0, %v2127_v0 }
 0x192   : > { %881 = vst.msk [vmem:[#allocation2 + $0xb0] sm:$0xff] %vm858_vm3, %v774_v15  ;;  %1999 = vmatprep.mubr.msk.f32.mxu0 %vm2128_vm0, %v2127_v0 }
 0x193   : > { %v1183_v18 = vpop.permute.xlu1 %1182 }
 0x194   : > { %v1049_v19 = vpop.permute.xlu0 %1048  ;;  %1190 = vst.msk [vmem:[#allocation2 + $0x165] sm:$0x3] %vm1189_vm11, %v1183_v18  ;;  %v1479_v20 = vpop.f32.mrf.mxu0 }
 0x195   : > { %1192 = vst.msk [vmem:[#allocation2 + $0x166] sm:$0x2] %vm1191_vm12, %v1183_v18  ;;  %v1480_v21 = vadd.f32 %v2771_v4, %v1479_v20 }
 0x196   : > { %1156 = vst.msk [vmem:[#allocation2 + $0xb0] sm:$0xff] %vm1133_vm4, %v1049_v19  ;;  %v1953_v22 = vpop.f32.mrf.mxu0 }
 0x197   : > { %1679 = vst.msk [vmem:[%s2780_s12 + $0x30] sm:$0xff] %vm1247_vm5, %v1480_v21 }
 0x199   : > { %v1589_v23 = vpop.f32.mrf.mxu1 }
 0x19a   : > { %v1590_v24 = vadd.f32 %v2771_v4, %v1589_v23 }
 0x19b   : > { %v2019_v25 = vpop.f32.mrf.mxu1 }
 0x19c   : > { %1701 = vst.msk [vmem:[%s2780_s12 + $0xe0] sm:$0xff] %vm1247_vm5, %v1590_v24  ;;  %v1237_v26 = vld [vmem:[#allocation2 + $0x160] sm:$0xff] }
 0x19d   : > { %v1215_v0 = vld [vmem:[#allocation2 + $0xb0] sm:$0xff]  ;;  %2066 = vmatmul.mubr.msk.f32.gmra.mxu1 %vm1247_vm5, %v1237_v26 }
 0x19e   : > { %2000 = vmatmul.mubr.msk.f32.gmra.mxu0 %vm1247_vm5, %v1215_v0 }
 0x1a0   : > { %v1484_v27 = vpop.f32.mrf.mxu0 }
 0x1a1   : > { %v1485_v28 = vadd.f32 %v2771_v4, %v1484_v27 }
 0x1a2   : > { %v1956_v29 = vpop.f32.mrf.mxu0 }
 0x1a3   : > { %1680 = vst.msk [vmem:[%s2780_s12 + $0x38] sm:$0xff] %vm1247_vm5, %v1485_v28 }
 0x1a5   : > { %v1594_v30 = vpop.f32.mrf.mxu1 }
 0x1a6   : > { %v1595_v31 = vadd.f32 %v2771_v4, %v1594_v30 }
 0x1a7   : > { %v2022_v32 = vpop.f32.mrf.mxu1 }
 0x1a8   : > { %1702 = vst.msk [vmem:[%s2780_s12 + $0xe8] sm:$0xff] %vm1247_vm5, %v1595_v31 }
 0x1ac   : > { %v1489_v33 = vpop.f32.mrf.mxu0 }
 0x1ad   : > { %v1490_v34 = vadd.f32 %v2771_v4, %v1489_v33 }
 0x1ae   : > { %v1959_v35 = vpop.f32.mrf.mxu0 }
 0x1af   : > { %1681 = vst.msk [vmem:[%s2780_s12 + $0x40] sm:$0xff] %vm1247_vm5, %v1490_v34 }
 0x1b1   : > { %v1599_v36 = vpop.f32.mrf.mxu1 }
 0x1b2   : > { %v1600_v37 = vadd.f32 %v2771_v4, %v1599_v36 }
 0x1b3   : > { %v2025_v38 = vpop.f32.mrf.mxu1 }
 0x1b4   : > { %1703 = vst.msk [vmem:[%s2780_s12 + $0xf0] sm:$0xff] %vm1247_vm5, %v1600_v37 }
 0x1b8   : > { %v1494_v39 = vpop.f32.mrf.mxu0 }
 0x1b9   : > { %v1495_v40 = vadd.f32 %v2771_v4, %v1494_v39 }
 0x1ba   : > { %v1962_v41 = vpop.f32.mrf.mxu0 }
 0x1bb   : > { %1682 = vst.msk [vmem:[%s2780_s12 + $0x48] sm:$0xff] %vm1247_vm5, %v1495_v40 }
 0x1bd   : > { %v1604_v42 = vpop.f32.mrf.mxu1 }
 0x1be   : > { %v1605_v43 = vadd.f32 %v2771_v4, %v1604_v42 }
 0x1bf   : > { %v2028_v44 = vpop.f32.mrf.mxu1 }
 0x1c0   : > { %1704 = vst.msk [vmem:[%s2780_s12 + $0xf8] sm:$0xff] %vm1247_vm5, %v1605_v43 }
 0x1c4   : > { %v1499_v45 = vpop.f32.mrf.mxu0 }
 0x1c5   : > { %v1500_v46 = vadd.f32 %v2771_v4, %v1499_v45 }
 0x1c6   : > { %v1965_v47 = vpop.f32.mrf.mxu0 }
 0x1c7   : > { %1683 = vst.msk [vmem:[%s2780_s12 + $0x50] sm:$0xff] %vm1247_vm5, %v1500_v46 }
 0x1c9   : > { %v1609_v48 = vpop.f32.mrf.mxu1 }
 0x1ca   : > { %v1610_v49 = vadd.f32 %v2771_v4, %v1609_v48 }
 0x1cb   : > { %v2031_v50 = vpop.f32.mrf.mxu1 }
 0x1cc   : > { %1705 = vst.msk [vmem:[%s2780_s12 + $0x100] sm:$0xff] %vm1247_vm5, %v1610_v49 }
 0x1d0   : > { %v1504_v51 = vpop.f32.mrf.mxu0 }
 0x1d1   : > { %v1505_v52 = vadd.f32 %v2771_v4, %v1504_v51 }
 0x1d2   : > { %v1968_v53 = vpop.f32.mrf.mxu0 }
 0x1d3   : > { %1684 = vst.msk [vmem:[%s2780_s12 + $0x58] sm:$0xff] %vm1247_vm5, %v1505_v52 }
 0x1d5   : > { %v1614_v54 = vpop.f32.mrf.mxu1 }
 0x1d6   : > { %v1615_v55 = vadd.f32 %v2771_v4, %v1614_v54 }
 0x1d7   : > { %v2034_v56 = vpop.f32.mrf.mxu1 }
 0x1d8   : > { %1706 = vst.msk [vmem:[%s2780_s12 + $0x108] sm:$0xff] %vm1247_vm5, %v1615_v55 }
 0x1dc   : > { %v1509_v57 = vpop.f32.mrf.mxu0 }
 0x1dd   : > { %v1510_v58 = vadd.f32 %v2771_v4, %v1509_v57 }
 0x1de   : > { %v1971_v59 = vpop.f32.mrf.mxu0 }
 0x1df   : > { %1685 = vst.msk [vmem:[%s2780_s12 + $0x60] sm:$0xff] %vm1247_vm5, %v1510_v58 }
 0x1e1   : > { %v1619_v60 = vpop.f32.mrf.mxu1 }
 0x1e2   : > { %v1620_v61 = vadd.f32 %v2771_v4, %v1619_v60 }
 0x1e3   : > { %v2037_v62 = vpop.f32.mrf.mxu1 }
 0x1e4   : > { %1707 = vst.msk [vmem:[%s2780_s12 + $0x110] sm:$0xff] %vm1247_vm5, %v1620_v61 }
 0x1e8   : > { %v1514_v63 = vpop.f32.mrf.mxu0 }
 0x1e9   : > { %v1515_v1 = vadd.f32 %v2771_v4, %v1514_v63 }
 0x1ea   : > { %v1974_v2 = vpop.f32.mrf.mxu0 }
 0x1eb   : > { %1686 = vst.msk [vmem:[%s2780_s12 + $0x68] sm:$0xff] %vm1247_vm5, %v1515_v1 }
 0x1ed   : > { %v1624_v3 = vpop.f32.mrf.mxu1 }
 0x1ee   : > { %v1625_v5 = vadd.f32 %v2771_v4, %v1624_v3 }
 0x1ef   : > { %v2040_v6 = vpop.f32.mrf.mxu1 }
 0x1f0   : > { %1708 = vst.msk [vmem:[%s2780_s12 + $0x118] sm:$0xff] %vm1247_vm5, %v1625_v5 }
 0x1f4   : > { %v1519_v7 = vpop.f32.mrf.mxu0 }
 0x1f5   : > { %v1520_v8 = vadd.f32 %v2771_v4, %v1519_v7 }
 0x1f6   : > { %v1977_v9 = vpop.f32.mrf.mxu0 }
 0x1f7   : > { %1687 = vst.msk [vmem:[%s2780_s12 + $0x70] sm:$0xff] %vm1247_vm5, %v1520_v8 }
 0x1f9   : > { %v1629_v10 = vpop.f32.mrf.mxu1 }
 0x1fa   : > { %v1630_v11 = vadd.f32 %v2771_v4, %v1629_v10 }
 0x1fb   : > { %v2043_v12 = vpop.f32.mrf.mxu1 }
 0x1fc   : > { %1709 = vst.msk [vmem:[%s2780_s12 + $0x120] sm:$0xff] %vm1247_vm5, %v1630_v11 }
 0x200   : > { %v1524_v13 = vpop.f32.mrf.mxu0 }
 0x201   : > { %v1525_v14 = vadd.f32 %v2771_v4, %v1524_v13 }
 0x202   : > { %v1980_v15 = vpop.f32.mrf.mxu0 }
 0x203   : > { %1688 = vst.msk [vmem:[%s2780_s12 + $0x78] sm:$0xff] %vm1247_vm5, %v1525_v14 }
 0x205   : > { %v1634_v16 = vpop.f32.mrf.mxu1 }
 0x206   : > { %v1635_v17 = vadd.f32 %v2771_v4, %v1634_v16 }
 0x207   : > { %v2046_v18 = vpop.f32.mrf.mxu1 }
 0x208   : > { %1710 = vst.msk [vmem:[%s2780_s12 + $0x128] sm:$0xff] %vm1247_vm5, %v1635_v17 }
 0x20c   : > { %v1529_v19 = vpop.f32.mrf.mxu0 }
 0x20d   : > { %v1530_v20 = vadd.f32 %v2771_v4, %v1529_v19 }
 0x20e   : > { %v1983_v21 = vpop.f32.mrf.mxu0 }
 0x20f   : > { %1689 = vst.msk [vmem:[%s2780_s12 + $0x80] sm:$0xff] %vm1247_vm5, %v1530_v20 }
 0x211   : > { %v1639_v22 = vpop.f32.mrf.mxu1 }
 0x212   : > { %v1640_v23 = vadd.f32 %v2771_v4, %v1639_v22 }
 0x213   : > { %v2049_v24 = vpop.f32.mrf.mxu1 }
 0x214   : > { %1711 = vst.msk [vmem:[%s2780_s12 + $0x130] sm:$0xff] %vm1247_vm5, %v1640_v23 }
 0x218   : > { %v1534_v25 = vpop.f32.mrf.mxu0 }
 0x219   : > { %v1535_v0 = vadd.f32 %v2771_v4, %v1534_v25 }
 0x21a   : > { %v1986_v26 = vpop.f32.mrf.mxu0 }
 0x21b   : > { %1690 = vst.msk [vmem:[%s2780_s12 + $0x88] sm:$0xff] %vm1247_vm5, %v1535_v0 }
 0x21d   : > { %v1644_v27 = vpop.f32.mrf.mxu1 }
 0x21e   : > { %v1645_v28 = vadd.f32 %v2771_v4, %v1644_v27 }
 0x21f   : > { %v2052_v29 = vpop.f32.mrf.mxu1 }
 0x220   : > { %1712 = vst.msk [vmem:[%s2780_s12 + $0x138] sm:$0xff] %vm1247_vm5, %v1645_v28 }
 0x224   : > { %v1539_v30 = vpop.f32.mrf.mxu0 }
 0x225   : > { %v1540_v31 = vadd.f32 %v2771_v4, %v1539_v30 }
 0x226   : > { %v1989_v32 = vpop.f32.mrf.mxu0 }
 0x227   : > { %1691 = vst.msk [vmem:[%s2780_s12 + $0x90] sm:$0xff] %vm1247_vm5, %v1540_v31 }
 0x22a   : > { %v1649_v33 = vpop.f32.mrf.mxu1 }
 0x22b   : > { %v1650_v34 = vadd.f32 %v2771_v4, %v1649_v33 }
 0x22c   : > { %v2055_v35 = vpop.f32.mrf.mxu1 }
 0x22d   : > { %1713 = vst.msk [vmem:[%s2780_s12 + $0x140] sm:$0xff] %vm1247_vm5, %v1650_v34 }
 0x230   : > { %v1544_v36 = vpop.f32.mrf.mxu0 }
 0x231   : > { %v1545_v37 = vadd.f32 %v2771_v4, %v1544_v36 }
 0x232   : > { %v1992_v38 = vpop.f32.mrf.mxu0 }
 0x233   : > { %1692 = vst.msk [vmem:[%s2780_s12 + $0x98] sm:$0xff] %vm1247_vm5, %v1545_v37 }
 0x236   : > { %v1654_v39 = vpop.f32.mrf.mxu1 }
 0x237   : > { %v1655_v40 = vadd.f32 %v2771_v4, %v1654_v39 }
 0x238   : > { %v2058_v41 = vpop.f32.mrf.mxu1 }
 0x239   : > { %1714 = vst.msk [vmem:[%s2780_s12 + $0x148] sm:$0xff] %vm1247_vm5, %v1655_v40 }
 0x241   : > { %v1549_v42 = vpop.f32.mrf.mxu0 }
 0x242   : > { %v1550_v43 = vadd.f32 %v2771_v4, %v1549_v42 }
 0x243   : > { %v1995_v44 = vpop.f32.mrf.mxu0 }
 0x244   : > { %1693 = vst.msk [vmem:[%s2780_s12 + $0xa0] sm:$0xff] %vm1247_vm5, %v1550_v43 }
 0x245   : > { %v1659_v45 = vpop.f32.mrf.mxu1 }
 0x246   : > { %v1660_v46 = vadd.f32 %v2771_v4, %v1659_v45 }
 0x247   : > { %v2061_v47 = vpop.f32.mrf.mxu1 }
 0x248   : > { %1715 = vst.msk [vmem:[%s2780_s12 + $0x150] sm:$0xff] %vm1247_vm5, %v1660_v46 }
 0x250   : > { %v1664_v49 = vpop.f32.mrf.mxu1 }
 0x251   : > { %v1554_v48 = vpop.f32.mrf.mxu0  ;;  %v1665_v51 = vadd.f32 %v2771_v4, %v1664_v49 }
 0x252   : > { %v1555_v50 = vadd.f32 %v2771_v4, %v1554_v48  ;;  %v2064_v53 = vpop.f32.mrf.mxu1 }
 0x253   : > { %v1998_v52 = vpop.f32.mrf.mxu0  ;;  %1716 = vst.msk [vmem:[%s2780_s12 + $0x158] sm:$0xff] %vm1247_vm5, %v1665_v51 }
 0x254   : > { %1694 = vst.msk [vmem:[%s2780_s12 + $0xa8] sm:$0xff] %vm1247_vm5, %v1555_v50 }
 0x25d   : > { %v1669_v55 = vpop.f32.mrf.mxu1 }
 0x25e   : > { %v1559_v54 = vpop.f32.mrf.mxu0  ;;  %v1670_v57 = vadd.f32 %v2771_v4, %v1669_v55 }
 0x25f   : > { %v1560_v56 = vadd.f32 %v2771_v4, %v1559_v54  ;;  %v2067_v59 = vpop.f32.mrf.mxu1 }
 0x260   : > { %v2001_v58 = vpop.f32.mrf.mxu0  ;;  %1717 = vst.msk [vmem:[%s2780_s12 + $0x160] sm:$0xff] %vm1247_vm5, %v1670_v57 }
 0x261   : > { %1695 = vst.msk [vmem:[%s2780_s12 + $0xb0] sm:$0xff] %vm1247_vm5, %v1560_v56 }
 0x262 PF: > { %s14_s17 = sadd.s32 1, %s2125_s17   ;;  %s2991_s15 = smov %s2121_s16 }
 0x263   : > { %p11_p5 = scmp.ge.s32.totalorder %s14_s17, 4   ;;  %s2992_s16 = smov %s2994_s18 }
 0x265   :  { %13 = sbr.rel (!%p11_p5) target bundleno = 2 (0x2), region = 69 }

</bundles_post_ra>
